<compile_context>
chip_gen: v6e
topology: v6e:2x2x1
jax: 0.10.0
libtpu: 0.0.40
codegen_flags: <defaults>
</compile_context>

<pallas_src>
import functools
import math

import jax
import jax.numpy as jnp
from jax.experimental import pallas as pl
from jax.experimental.pallas import tpu as pltpu


# ----------------------------- tiling helpers --------------------------------

def _pick_tile(dim, target, align):
    """Largest tile <= target that divides dim and is a multiple of align;
    falls back to the full dimension (always legal: block == full dim)."""
    # TODO(synk): for huge dims with no aligned divisor this falls back to the
    # whole dim; a cdiv+mask grid would bound VMEM, but every shape RoBERTa
    # uses (S in {8,128,512}, H=768, I=3072, M=B*S) divides cleanly.
    if dim <= target:
        return dim
    t = (target // align) * align
    while t >= align:
        if dim % t == 0:
            return t
        t -= align
    return dim


# ----------------------------- Pallas kernels --------------------------------

def _layernorm_kernel(x_ref, g_ref, b_ref, o_ref, *, eps):
    x = x_ref[...].astype(jnp.float32)
    mu = jnp.mean(x, axis=-1, keepdims=True)
    var = jnp.mean(jnp.square(x - mu), axis=-1, keepdims=True)
    xn = (x - mu) * jax.lax.rsqrt(var + eps)
    o_ref[...] = (xn * g_ref[...] + b_ref[...]).astype(o_ref.dtype)


def pallas_layernorm(x, g, b, *, eps=1e-5, out_dtype=jnp.bfloat16,
                     tm_target=512):
    M, H = x.shape
    tm = _pick_tile(M, tm_target, 16)
    kernel = functools.partial(_layernorm_kernel, eps=eps)
    return pl.pallas_call(
        kernel,
        out_shape=jax.ShapeDtypeStruct((M, H), out_dtype),
        grid=(M // tm,),
        in_specs=[pl.BlockSpec((tm, H), lambda i: (i, 0)),
                  pl.BlockSpec((1, H), lambda i: (0, 0)),
                  pl.BlockSpec((1, H), lambda i: (0, 0))],
        out_specs=pl.BlockSpec((tm, H), lambda i: (i, 0)),
        compiler_params=pltpu.CompilerParams(
            dimension_semantics=("parallel",)),
    )(x, g.reshape(1, H), b.reshape(1, H))


def _qkv_attn_kernel(x_ref, w_ref, b_ref, m_ref, o_ref, *, dH):
    # One (batch, head) grid step.
    # x:(S,H) bf16, w:(H,3dH) bf16 head-major (softmax scale folded into the
    # q columns), b:(1,3dH) f32, m:(1,S) additive key-mask bias, o:(S,dH) bf16.
    x = x_ref[...]
    qkv = jnp.dot(x, w_ref[...], preferred_element_type=jnp.float32)
    qkv = (qkv + b_ref[...]).astype(jnp.bfloat16)          # single cast
    q = qkv[:, :dH]
    k = qkv[:, dH:2 * dH]
    v = qkv[:, 2 * dH:]
    s = jax.lax.dot_general(q, k, (((1,), (1,)), ((), ())),
                            preferred_element_type=jnp.float32)
    s = s + m_ref[...]                                       # mask over keys
    mx = jnp.max(s, axis=-1, keepdims=True)
    p = jnp.exp(s - mx)
    p = p * pl.reciprocal(jnp.sum(p, axis=-1, keepdims=True), approx=True)
    o_ref[...] = jnp.dot(p.astype(jnp.bfloat16), v,
                         preferred_element_type=jnp.float32).astype(o_ref.dtype)


def pallas_qkv_attention(x3, wqkv_hm, bqkv_hm, mask_bias, *, n_heads):
    # x3: (B, S, H) bf16; wqkv_hm: (nH, H, 3dH) bf16; bqkv_hm: (nH, 1, 3dH) f32
    # mask_bias: (B, 1, S) f32.  Output: (B, nH, S, dH) bf16 (head-blocked).
    B, S, H = x3.shape
    dH = H // n_heads
    kernel = functools.partial(_qkv_attn_kernel, dH=dH)
    flops = 2 * B * S * H * 3 * H + 4 * B * n_heads * S * S * dH
    bytes_accessed = (B * S * H * 2                    # x (fetched once per b)
                      + B * n_heads * H * 3 * dH * 2   # wqkv re-read per batch
                      + B * S * 4 + B * S * H * 2)     # mask + ctx out
    return pl.pallas_call(
        kernel,
        out_shape=jax.ShapeDtypeStruct((B, n_heads, S, dH), jnp.bfloat16),
        grid=(B, n_heads),
        in_specs=[pl.BlockSpec((None, S, H), lambda b, h: (b, 0, 0)),
                  pl.BlockSpec((None, H, 3 * dH), lambda b, h: (h, 0, 0)),
                  pl.BlockSpec((None, 1, 3 * dH), lambda b, h: (h, 0, 0)),
                  pl.BlockSpec((None, 1, S), lambda b, h: (b, 0, 0))],
        out_specs=pl.BlockSpec((None, None, S, dH), lambda b, h: (b, h, 0, 0)),
        compiler_params=pltpu.CompilerParams(
            dimension_semantics=("parallel", "parallel")),
        cost_estimate=pl.CostEstimate(
            flops=flops, transcendentals=B * n_heads * S * S,
            bytes_accessed=bytes_accessed),
    )(x3, wqkv_hm, bqkv_hm, mask_bias)


def _attnout_res_ln_kernel(ctx_ref, wo_ref, bo_ref, res_ref, g_ref, bb_ref,
                           o_ref, acc_ref, *, eps):
    # LayerNorm( sum_h ctx_h @ Wo_h + bo + residual ); head axis is the
    # reduction grid axis, accumulated in f32 VMEM scratch.
    h = pl.program_id(1)

    @pl.when(h == 0)
    def _():
        acc_ref[...] = jnp.zeros_like(acc_ref)

    acc_ref[...] += jnp.dot(ctx_ref[...], wo_ref[...],
                            preferred_element_type=jnp.float32)

    @pl.when(h == pl.num_programs(1) - 1)
    def _():
        y = acc_ref[...] + bo_ref[...] + res_ref[...].astype(jnp.float32)
        mu = jnp.mean(y, axis=-1, keepdims=True)
        var = jnp.mean(jnp.square(y - mu), axis=-1, keepdims=True)
        yn = (y - mu) * jax.lax.rsqrt(var + eps)
        o_ref[...] = (yn * g_ref[...] + bb_ref[...]).astype(o_ref.dtype)


def pallas_attnout_res_ln(ctx, wo_hm, bo, res3, g, beta, *, eps=1e-5):
    B, nH, S, dH = ctx.shape
    H = res3.shape[-1]
    kernel = functools.partial(_attnout_res_ln_kernel, eps=eps)
    flops = 2 * B * S * H * H
    bytes_accessed = (B * nH * S * dH * 2 + B * nH * dH * H * 2
                      + 2 * B * S * H * 2)
    return pl.pallas_call(
        kernel,
        out_shape=jax.ShapeDtypeStruct((B, S, H), jnp.bfloat16),
        grid=(B, nH),
        in_specs=[pl.BlockSpec((None, None, S, dH), lambda b, h: (b, h, 0, 0)),
                  pl.BlockSpec((None, dH, H), lambda b, h: (h, 0, 0)),
                  pl.BlockSpec((1, H), lambda b, h: (0, 0)),
                  pl.BlockSpec((None, S, H), lambda b, h: (b, 0, 0)),
                  pl.BlockSpec((1, H), lambda b, h: (0, 0)),
                  pl.BlockSpec((1, H), lambda b, h: (0, 0))],
        out_specs=pl.BlockSpec((None, S, H), lambda b, h: (b, 0, 0)),
        scratch_shapes=[pltpu.VMEM((S, H), jnp.float32)],
        compiler_params=pltpu.CompilerParams(
            dimension_semantics=("parallel", "arbitrary")),
        cost_estimate=pl.CostEstimate(flops=flops, transcendentals=0,
                                      bytes_accessed=bytes_accessed),
    )(ctx, wo_hm, bo.reshape(1, H), res3, g.reshape(1, H), beta.reshape(1, H))


def _ffn_res_ln_kernel(x_ref, wi_ref, bi_ref, wf_ref, bf_ref, g_ref, bb_ref,
                       o_ref, acc_ref, *, eps):
    # Fused FFN block: acc += gelu(x @ Wi[:,k] + bi[k]) @ Wf[k,:];
    # at k==last: y = acc + bf + x (residual); LayerNorm(y).
    k = pl.program_id(1)

    @pl.when(k == 0)
    def _():
        acc_ref[...] = jnp.zeros_like(acc_ref)

    x = x_ref[...]
    h = jnp.dot(x, wi_ref[...], preferred_element_type=jnp.float32)
    h = h + bi_ref[...]
    h = 0.5 * h * (1.0 + jax.lax.erf(h * (1.0 / math.sqrt(2.0))))   # exact GELU
    acc_ref[...] += jnp.dot(h.astype(jnp.bfloat16), wf_ref[...],
                            preferred_element_type=jnp.float32)

    @pl.when(k == pl.num_programs(1) - 1)
    def _():
        y = acc_ref[...] + bf_ref[...] + x_ref[...].astype(jnp.float32)
        mu = jnp.mean(y, axis=-1, keepdims=True)
        var = jnp.mean(jnp.square(y - mu), axis=-1, keepdims=True)
        yn = (y - mu) * jax.lax.rsqrt(var + eps)
        o_ref[...] = (yn * g_ref[...] + bb_ref[...]).astype(o_ref.dtype)


def pallas_ffn_res_ln(x, wi, bi, wf, bf, g, beta, *, eps=1e-5,
                      tm_target=512, tk_target=512):
    M, H = x.shape
    I = wi.shape[1]
    tm = _pick_tile(M, tm_target, 16)
    tk = _pick_tile(I, tk_target, 128)
    kernel = functools.partial(_ffn_res_ln_kernel, eps=eps)
    flops = 4 * M * H * I
    bytes_accessed = (M * H * 2                          # x (doubles as residual)
                      + (M // tm) * 2 * H * I * 2        # Wi+Wf re-read per M tile
                      + M * H * 2)                       # output
    return pl.pallas_call(
        kernel,
        out_shape=jax.ShapeDtypeStruct((M, H), jnp.bfloat16),
        grid=(M // tm, I // tk),
        in_specs=[pl.BlockSpec((tm, H), lambda i, k: (i, 0)),
                  pl.BlockSpec((H, tk), lambda i, k: (0, k)),
                  pl.BlockSpec((1, tk), lambda i, k: (0, k)),
                  pl.BlockSpec((tk, H), lambda i, k: (k, 0)),
                  pl.BlockSpec((1, H), lambda i, k: (0, 0)),
                  pl.BlockSpec((1, H), lambda i, k: (0, 0)),
                  pl.BlockSpec((1, H), lambda i, k: (0, 0))],
        out_specs=pl.BlockSpec((tm, H), lambda i, k: (i, 0)),
        scratch_shapes=[pltpu.VMEM((tm, H), jnp.float32)],
        compiler_params=pltpu.CompilerParams(
            dimension_semantics=("parallel", "arbitrary")),
        cost_estimate=pl.CostEstimate(flops=flops, transcendentals=M * I,
                                      bytes_accessed=bytes_accessed),
    )(x, wi, bi.reshape(1, I), wf, bf.reshape(1, H),
      g.reshape(1, H), beta.reshape(1, H))


def _classifier_kernel(x_ref, wd_ref, bd_ref, wo_ref, bo_ref, o_ref):
    # dropout -> dense -> tanh -> dropout -> out   (dropout == identity, eval)
    x = x_ref[...].astype(jnp.bfloat16)
    h = jnp.dot(x, wd_ref[...], preferred_element_type=jnp.float32)
    h = jnp.tanh(h + bd_ref[...])
    y = jnp.dot(h.astype(jnp.bfloat16), wo_ref[...],
                preferred_element_type=jnp.float32) + bo_ref[...]
    o_ref[...] = y.astype(o_ref.dtype)


def pallas_classifier(cls, wd, bd, wo, bo):
    B, H = cls.shape
    L = wo.shape[1]
    return pl.pallas_call(
        _classifier_kernel,
        out_shape=jax.ShapeDtypeStruct((B, L), jnp.float32),
        grid=(1,),
        in_specs=[pl.BlockSpec((B, H), lambda i: (0, 0)),
                  pl.BlockSpec((H, H), lambda i: (0, 0)),
                  pl.BlockSpec((1, H), lambda i: (0, 0)),
                  pl.BlockSpec((H, L), lambda i: (0, 0)),
                  pl.BlockSpec((1, L), lambda i: (0, 0))],
        out_specs=pl.BlockSpec((B, L), lambda i: (0, 0)),
    )(cls, wd, bd.reshape(1, H), wo, bo.reshape(1, L))


# --------------------------- parameters (synthetic) ---------------------------

# TODO(synk): RobertaModel.from_pretrained loads a checkpoint; here the same
# architecture is initialized deterministically in-script instead.
def init_params(key, *, vocab, hidden, n_layers, n_heads, intermediate,
                max_pos, num_labels):
    cnt = [0]
    dH = hidden // n_heads
    scale = 1.0 / math.sqrt(dH)

    def nxt():
        cnt[0] += 1
        return jax.random.fold_in(key, cnt[0])

    def nrm(shape, dtype=jnp.float32):
        return (0.02 * jax.random.normal(nxt(), shape)).astype(dtype)

    def zeros(shape):
        return jnp.zeros(shape, jnp.float32)

    def ones(shape):
        return jnp.ones(shape, jnp.float32)

    bf16 = jnp.bfloat16

    def head_major_qkv(wq, wk, wv, bq, bk, bv):
        # -> (nH, H, 3dH) with [q_h | k_h | v_h] per head; 1/sqrt(dH) folded
        # into the q columns / q bias so the kernel never rescales q.
        def cols(w):
            return jnp.transpose(w.reshape(hidden, n_heads, dH), (1, 0, 2))
        w_hm = jnp.concatenate([cols(wq) * scale, cols(wk), cols(wv)], axis=-1)
        b_hm = jnp.concatenate([bq.reshape(n_heads, dH) * scale,
                                bk.reshape(n_heads, dH),
                                bv.reshape(n_heads, dH)], axis=-1)
        return w_hm.astype(bf16), b_hm.reshape(n_heads, 1, 3 * dH)

    params = dict(
        word_emb=nrm((vocab, hidden)),
        pos_emb=nrm((max_pos, hidden)),
        tt_emb=nrm((1, hidden)),
        emb_ln_g=ones((hidden,)), emb_ln_b=zeros((hidden,)),
        dense_w=nrm((hidden, hidden), bf16), dense_b=zeros((hidden,)),
        out_w=nrm((hidden, num_labels), bf16), out_b=zeros((num_labels,)),
        layers=[],
    )
    for _ in range(n_layers):
        wq = nrm((hidden, hidden))
        wk = nrm((hidden, hidden))
        wv = nrm((hidden, hidden))
        wqkv_hm, bqkv_hm = head_major_qkv(
            wq, wk, wv, zeros((hidden,)), zeros((hidden,)), zeros((hidden,)))
        wo = nrm((hidden, hidden))
        params["layers"].append(dict(
            wqkv_hm=wqkv_hm, bqkv_hm=bqkv_hm,
            # attention output projection re-laid out head-major (nH, dH, H)
            wo_hm=wo.reshape(n_heads, dH, hidden).astype(bf16),
            bo=zeros((hidden,)),
            ln1_g=ones((hidden,)), ln1_b=zeros((hidden,)),
            wi=nrm((hidden, intermediate), bf16), bi=zeros((intermediate,)),
            wf=nrm((intermediate, hidden), bf16), bf=zeros((hidden,)),
            ln2_g=ones((hidden,)), ln2_b=zeros((hidden,)),
        ))
    return params


# -------------------------------- forward pass --------------------------------

def roberta_glue_forward(params, input_ids, attention_mask, *, n_heads,
                         pad_idx=1):
    B, S = input_ids.shape
    H = params["word_emb"].shape[1]

    # --- RoBERTa embeddings (gathers kept as plain-JAX glue) ---
    tok_mask = (input_ids != pad_idx).astype(jnp.int32)
    pos_ids = jnp.cumsum(tok_mask, axis=1) * tok_mask + pad_idx
    emb = (params["word_emb"][input_ids]
           + params["pos_emb"][pos_ids]
           + params["tt_emb"][0][None, None, :])
    x2d = pallas_layernorm(emb.reshape(B * S, H),
                           params["emb_ln_g"], params["emb_ln_b"])   # bf16

    # additive attention-mask bias over keys, (B, 1, S)
    mask_bias = ((1.0 - attention_mask.astype(jnp.float32)) * -1e9
                 ).reshape(B, 1, S)

    # --- encoder layers (3 fused pallas_calls per layer) ---
    for lyr in params["layers"]:
        x3 = x2d.reshape(B, S, H)
        ctx = pallas_qkv_attention(x3, lyr["wqkv_hm"], lyr["bqkv_hm"],
                                   mask_bias, n_heads=n_heads)
        x3 = pallas_attnout_res_ln(ctx, lyr["wo_hm"], lyr["bo"], x3,
                                   lyr["ln1_g"], lyr["ln1_b"])
        x2d = x3.reshape(B * S, H)
        x2d = pallas_ffn_res_ln(x2d, lyr["wi"], lyr["bi"], lyr["wf"],
                                lyr["bf"], lyr["ln2_g"], lyr["ln2_b"])

    # --- classification head: take [CLS] token, dense+tanh, out ---
    cls = x2d.reshape(B, S, H)[:, 0, :]
    logits = pallas_classifier(cls, params["dense_w"], params["dense_b"],
                               params["out_w"], params["out_b"])
    return logits


# ------------------------------------ main -------------------------------------

if __name__ == "__main__":
    # small shapes consistent with the module (hidden scaled 768 -> 32)
    B, S, H = 2, 8, 32
    N_HEADS, N_LAYERS, INTERMEDIATE = 4, 2, 64
    VOCAB, PAD_IDX = 100, 1
    NUM_LABELS = 2          # e.g. task = 'sst2'
    MAX_POS = S + 2

    key = jax.random.PRNGKey(0)
    params = init_params(key, vocab=VOCAB, hidden=H, n_layers=N_LAYERS,
                         n_heads=N_HEADS, intermediate=INTERMEDIATE,
                         max_pos=MAX_POS, num_labels=NUM_LABELS)

    input_ids = jax.random.randint(jax.random.fold_in(key, 9999), (B, S),
                                   2, VOCAB, dtype=jnp.int32)
    attention_mask = jnp.ones((B, S), dtype=jnp.int32)

    fwd = jax.jit(functools.partial(roberta_glue_forward,
                                    n_heads=N_HEADS, pad_idx=PAD_IDX))
    logits = fwd(params, input_ids, attention_mask)
    jax.block_until_ready(logits)
    assert logits.shape == (B, NUM_LABELS) and logits.dtype == jnp.float32
    print("KERNEL_OK")
</pallas_src>

<mosaic_0001>
module attributes {stable_mosaic.version = 11 : i64} {
  func.func @_attnout_res_ln_kernel(%arg0: i32, %arg1: i32, %arg2: memref<1x1x8x8xbf16, #tpu.memory_space<vmem>>, %arg3: memref<1x8x32xbf16, #tpu.memory_space<vmem>>, %arg4: memref<1x32xf32, #tpu.memory_space<vmem>>, %arg5: memref<1x8x32xbf16, #tpu.memory_space<vmem>>, %arg6: memref<1x32xf32, #tpu.memory_space<vmem>>, %arg7: memref<1x32xf32, #tpu.memory_space<vmem>>, %arg8: memref<1x8x32xbf16, #tpu.memory_space<vmem>>, %arg9: memref<8x32xf32, #tpu.memory_space<vmem>>) attributes {dimension_semantics = [#tpu.dimension_semantics<parallel>, #tpu.dimension_semantics<arbitrary>], iteration_bounds = array<i64: 2, 4>, scalar_prefetch = 0 : i64, scratch_operands = 1 : i64, tpu.core_type = #tpu.core_type<tc>, window_params = [{transform_indices = @transform_0, window_bounds = array<i64: 1, 1, 8, 8>}, {transform_indices = @transform_1, window_bounds = array<i64: 1, 8, 32>}, {pipeline_mode = #tpu.pipeline_mode<synchronous>, transform_indices = @transform_2, window_bounds = array<i64: 1, 32>}, {transform_indices = @transform_3, window_bounds = array<i64: 1, 8, 32>}, {pipeline_mode = #tpu.pipeline_mode<synchronous>, transform_indices = @transform_4, window_bounds = array<i64: 1, 32>}, {pipeline_mode = #tpu.pipeline_mode<synchronous>, transform_indices = @transform_5, window_bounds = array<i64: 1, 32>}, {transform_indices = @transform_6, window_bounds = array<i64: 1, 8, 32>}]} {
    %c0_i32 = arith.constant 0 : i32
    %0 = arith.cmpi eq, %arg1, %c0_i32 : i32
    %1 = arith.extui %0 : i1 to i32
    %c0_i32_0 = arith.constant 0 : i32
    %2 = arith.cmpi ne, %1, %c0_i32_0 : i32
    scf.if %2 {
      %cst_12 = arith.constant 0.000000e+00 : f32
      %14 = vector.broadcast %cst_12 : f32 to vector<8x32xf32>
      %c0_13 = arith.constant 0 : index
      %c0_14 = arith.constant 0 : index
      %15 = vector.load %arg9[%c0_13, %c0_14] : memref<8x32xf32, #tpu.memory_space<vmem>>, vector<8x32xf32>
      tpu.vector_store %arg9[%c0_13, %c0_14], %14 {strides = array<i32>} : memref<8x32xf32, #tpu.memory_space<vmem>>, vector<8x32xf32>,
    } else {
    }
    %c0 = arith.constant 0 : index
    %c0_1 = arith.constant 0 : index
    %3 = vector.load %arg9[%c0, %c0_1] : memref<8x32xf32, #tpu.memory_space<vmem>>, vector<8x32xf32>
    %c0_2 = arith.constant 0 : index
    %c0_3 = arith.constant 0 : index
    %c0_4 = arith.constant 0 : index
    %c0_5 = arith.constant 0 : index
    %4 = vector.load %arg2[%c0_2, %c0_3, %c0_4, %c0_5] : memref<1x1x8x8xbf16, #tpu.memory_space<vmem>>, vector<1x1x8x8xbf16>
    %5 = vector.shape_cast %4 : vector<1x1x8x8xbf16> to vector<8x8xbf16>
    %c0_6 = arith.constant 0 : index
    %c0_7 = arith.constant 0 : index
    %c0_8 = arith.constant 0 : index
    %6 = vector.load %arg3[%c0_6, %c0_7, %c0_8] : memref<1x8x32xbf16, #tpu.memory_space<vmem>>, vector<1x8x32xbf16>
    %7 = vector.shape_cast %6 : vector<1x8x32xbf16> to vector<8x32xbf16>
    %cst = arith.constant dense<0.000000e+00> : vector<8x32xf32>
    %8 = tpu.matmul %5, %7, %cst {dimension_numbers = #tpu.dot_dimension_numbers<[1], [0], [0], [1], [0, 0, 1, 1], [], []>} : vector<8x8xbf16>, vector<8x32xbf16>, vector<8x32xf32> -> vector<8x32xf32>
    %9 = arith.addf %3, %8 : vector<8x32xf32>
    %c0_9 = arith.constant 0 : index
    %c0_10 = arith.constant 0 : index
    %10 = vector.load %arg9[%c0_9, %c0_10] : memref<8x32xf32, #tpu.memory_space<vmem>>, vector<8x32xf32>
    tpu.vector_store %arg9[%c0_9, %c0_10], %9 {strides = array<i32>} : memref<8x32xf32, #tpu.memory_space<vmem>>, vector<8x32xf32>,
    %c3_i32 = arith.constant 3 : i32
    %11 = arith.cmpi eq, %arg1, %c3_i32 : i32
    %12 = arith.extui %11 : i1 to i32
    %c0_i32_11 = arith.constant 0 : i32
    %13 = arith.cmpi ne, %12, %c0_i32_11 : i32
    scf.if %13 {
      %c0_12 = arith.constant 0 : index
      %c0_13 = arith.constant 0 : index
      %14 = vector.load %arg9[%c0_12, %c0_13] : memref<8x32xf32, #tpu.memory_space<vmem>>, vector<8x32xf32>
      %c0_14 = arith.constant 0 : index
      %c0_15 = arith.constant 0 : index
      %15 = vector.load %arg4[%c0_14, %c0_15] : memref<1x32xf32, #tpu.memory_space<vmem>>, vector<1x32xf32>
      %16 = vector.broadcast %15 : vector<1x32xf32> to vector<8x32xf32>
      %17 = arith.addf %14, %16 : vector<8x32xf32>
      %c0_16 = arith.constant 0 : index
      %c0_17 = arith.constant 0 : index
      %c0_18 = arith.constant 0 : index
      %18 = vector.load %arg5[%c0_16, %c0_17, %c0_18] : memref<1x8x32xbf16, #tpu.memory_space<vmem>>, vector<1x8x32xbf16>
      %19 = vector.shape_cast %18 : vector<1x8x32xbf16> to vector<8x32xbf16>
      %20 = arith.extf %19 : vector<8x32xbf16> to vector<8x32xf32>
      %21 = arith.addf %17, %20 : vector<8x32xf32>
      %cst_19 = arith.constant dense<0.000000e+00> : vector<8xf32>
      %22 = vector.multi_reduction <add>, %21, %cst_19 [1] : vector<8x32xf32> to vector<8xf32>
      %23 = vector.shape_cast %22 : vector<8xf32> to vector<8x1xf32>
      %cst_20 = arith.constant 3.200000e+01 : f32
      %24 = vector.broadcast %cst_20 : f32 to vector<8x1xf32>
      %25 = arith.divf %23, %24 : vector<8x1xf32>
      %26 = vector.broadcast %25 : vector<8x1xf32> to vector<8x32xf32>
      %27 = arith.subf %21, %26 : vector<8x32xf32>
      %28 = arith.mulf %27, %27 : vector<8x32xf32>
      %cst_21 = arith.constant dense<0.000000e+00> : vector<8xf32>
      %29 = vector.multi_reduction <add>, %28, %cst_21 [1] : vector<8x32xf32> to vector<8xf32>
      %30 = vector.shape_cast %29 : vector<8xf32> to vector<8x1xf32>
      %cst_22 = arith.constant 3.200000e+01 : f32
      %31 = vector.broadcast %cst_22 : f32 to vector<8x1xf32>
      %32 = arith.divf %30, %31 : vector<8x1xf32>
      %33 = vector.broadcast %25 : vector<8x1xf32> to vector<8x32xf32>
      %34 = arith.subf %21, %33 : vector<8x32xf32>
      %cst_23 = arith.constant 9.99999974E-6 : f32
      %35 = vector.broadcast %cst_23 : f32 to vector<8x1xf32>
      %36 = arith.addf %32, %35 : vector<8x1xf32>
      %37 = math.rsqrt %36 : vector<8x1xf32>
      %38 = vector.broadcast %37 : vector<8x1xf32> to vector<8x32xf32>
      %39 = arith.mulf %34, %38 : vector<8x32xf32>
      %c0_24 = arith.constant 0 : index
      %c0_25 = arith.constant 0 : index
      %40 = vector.load %arg6[%c0_24, %c0_25] : memref<1x32xf32, #tpu.memory_space<vmem>>, vector<1x32xf32>
      %41 = vector.broadcast %40 : vector<1x32xf32> to vector<8x32xf32>
      %42 = arith.mulf %39, %41 : vector<8x32xf32>
      %c0_26 = arith.constant 0 : index
      %c0_27 = arith.constant 0 : index
      %43 = vector.load %arg7[%c0_26, %c0_27] : memref<1x32xf32, #tpu.memory_space<vmem>>, vector<1x32xf32>
      %44 = vector.broadcast %43 : vector<1x32xf32> to vector<8x32xf32>
      %45 = arith.addf %42, %44 : vector<8x32xf32>
      %46 = arith.truncf %45 : vector<8x32xf32> to vector<8x32xbf16>
      %c0_28 = arith.constant 0 : index
      %c0_29 = arith.constant 0 : index
      %c0_30 = arith.constant 0 : index
      %47 = vector.load %arg8[%c0_28, %c0_29, %c0_30] : memref<1x8x32xbf16, #tpu.memory_space<vmem>>, vector<1x8x32xbf16>
      %48 = vector.shape_cast %47 : vector<1x8x32xbf16> to vector<8x32xbf16>
      %49 = vector.shape_cast %46 : vector<8x32xbf16> to vector<1x8x32xbf16>
      tpu.vector_store %arg8[%c0_28, %c0_29, %c0_30], %49 {strides = array<i32>} : memref<1x8x32xbf16, #tpu.memory_space<vmem>>, vector<1x8x32xbf16>,
    } else {
    }
    return
  }
  func.func @transform_0(%arg0: i32, %arg1: i32) -> (i32, i32, i32, i32) {
    %c0_i32 = arith.constant 0 : i32
    %c0_i32_0 = arith.constant 0 : i32
    %c0_i32_1 = arith.constant 0 : i32
    return %arg0, %arg1, %c0_i32, %c0_i32_0 : i32, i32, i32, i32
  }
  func.func @transform_1(%arg0: i32, %arg1: i32) -> (i32, i32, i32) {
    %c0_i32 = arith.constant 0 : i32
    %c0_i32_0 = arith.constant 0 : i32
    %c0_i32_1 = arith.constant 0 : i32
    return %arg1, %c0_i32, %c0_i32_0 : i32, i32, i32
  }
  func.func @transform_2(%arg0: i32, %arg1: i32) -> (i32, i32) {
    %c0_i32 = arith.constant 0 : i32
    %c0_i32_0 = arith.constant 0 : i32
    %c0_i32_1 = arith.constant 0 : i32
    return %c0_i32, %c0_i32_0 : i32, i32
  }
  func.func @transform_3(%arg0: i32, %arg1: i32) -> (i32, i32, i32) {
    %c0_i32 = arith.constant 0 : i32
    %c0_i32_0 = arith.constant 0 : i32
    %c0_i32_1 = arith.constant 0 : i32
    return %arg0, %c0_i32, %c0_i32_0 : i32, i32, i32
  }
  func.func @transform_4(%arg0: i32, %arg1: i32) -> (i32, i32) {
    %c0_i32 = arith.constant 0 : i32
    %c0_i32_0 = arith.constant 0 : i32
    %c0_i32_1 = arith.constant 0 : i32
    return %c0_i32, %c0_i32_0 : i32, i32
  }
  func.func @transform_5(%arg0: i32, %arg1: i32) -> (i32, i32) {
    %c0_i32 = arith.constant 0 : i32
    %c0_i32_0 = arith.constant 0 : i32
    %c0_i32_1 = arith.constant 0 : i32
    return %c0_i32, %c0_i32_0 : i32, i32
  }
  func.func @transform_6(%arg0: i32, %arg1: i32) -> (i32, i32, i32) {
    %c0_i32 = arith.constant 0 : i32
    %c0_i32_0 = arith.constant 0 : i32
    %c0_i32_1 = arith.constant 0 : i32
    return %arg0, %c0_i32, %c0_i32_0 : i32, i32, i32
  }
}

module attributes {stable_mosaic.version = 11 : i64} {
  func.func @_qkv_attn_kernel(%arg0: i32, %arg1: i32, %arg2: memref<1x8x32xbf16, #tpu.memory_space<vmem>>, %arg3: memref<1x32x24xbf16, #tpu.memory_space<vmem>>, %arg4: memref<1x1x24xf32, #tpu.memory_space<vmem>>, %arg5: memref<1x1x8xf32, #tpu.memory_space<vmem>>, %arg6: memref<1x1x8x8xbf16, #tpu.memory_space<vmem>>) attributes {dimension_semantics = [#tpu.dimension_semantics<parallel>, #tpu.dimension_semantics<parallel>], iteration_bounds = array<i64: 2, 4>, scalar_prefetch = 0 : i64, scratch_operands = 0 : i64, tpu.core_type = #tpu.core_type<tc>, window_params = [{transform_indices = @transform_0, window_bounds = array<i64: 1, 8, 32>}, {transform_indices = @transform_1, window_bounds = array<i64: 1, 32, 24>}, {transform_indices = @transform_2, window_bounds = array<i64: 1, 1, 24>}, {transform_indices = @transform_3, window_bounds = array<i64: 1, 1, 8>}, {transform_indices = @transform_4, window_bounds = array<i64: 1, 1, 8, 8>}]} {
    %c0 = arith.constant 0 : index
    %c0_0 = arith.constant 0 : index
    %c0_1 = arith.constant 0 : index
    %0 = vector.load %arg2[%c0, %c0_0, %c0_1] : memref<1x8x32xbf16, #tpu.memory_space<vmem>>, vector<1x8x32xbf16>
    %1 = vector.shape_cast %0 : vector<1x8x32xbf16> to vector<8x32xbf16>
    %c0_2 = arith.constant 0 : index
    %c0_3 = arith.constant 0 : index
    %c0_4 = arith.constant 0 : index
    %2 = vector.load %arg3[%c0_2, %c0_3, %c0_4] : memref<1x32x24xbf16, #tpu.memory_space<vmem>>, vector<1x32x24xbf16>
    %3 = vector.shape_cast %2 : vector<1x32x24xbf16> to vector<32x24xbf16>
    %cst = arith.constant dense<0.000000e+00> : vector<8x24xf32>
    %4 = tpu.matmul %1, %3, %cst {dimension_numbers = #tpu.dot_dimension_numbers<[1], [0], [0], [1], [0, 0, 1, 1], [], []>} : vector<8x32xbf16>, vector<32x24xbf16>, vector<8x24xf32> -> vector<8x24xf32>
    %c0_5 = arith.constant 0 : index
    %c0_6 = arith.constant 0 : index
    %c0_7 = arith.constant 0 : index
    %5 = vector.load %arg4[%c0_5, %c0_6, %c0_7] : memref<1x1x24xf32, #tpu.memory_space<vmem>>, vector<1x1x24xf32>
    %6 = vector.shape_cast %5 : vector<1x1x24xf32> to vector<1x24xf32>
    %7 = vector.broadcast %6 : vector<1x24xf32> to vector<8x24xf32>
    %8 = arith.addf %4, %7 : vector<8x24xf32>
    %9 = arith.truncf %8 : vector<8x24xf32> to vector<8x24xbf16>
    %10 = vector.extract_strided_slice %9 {offsets = [0, 0], sizes = [8, 8], strides = [1, 1]} : vector<8x24xbf16> to vector<8x8xbf16>
    %11 = vector.extract_strided_slice %9 {offsets = [0, 8], sizes = [8, 8], strides = [1, 1]} : vector<8x24xbf16> to vector<8x8xbf16>
    %12 = vector.extract_strided_slice %9 {offsets = [0, 16], sizes = [8, 8], strides = [1, 1]} : vector<8x24xbf16> to vector<8x8xbf16>
    %cst_8 = arith.constant dense<0.000000e+00> : vector<8x8xf32>
    %13 = tpu.matmul %10, %11, %cst_8 {dimension_numbers = #tpu.dot_dimension_numbers<[1], [1], [0], [0], [0, 0, 1, 0], [], []>} : vector<8x8xbf16>, vector<8x8xbf16>, vector<8x8xf32> -> vector<8x8xf32>
    %c0_9 = arith.constant 0 : index
    %c0_10 = arith.constant 0 : index
    %c0_11 = arith.constant 0 : index
    %14 = vector.load %arg5[%c0_9, %c0_10, %c0_11] : memref<1x1x8xf32, #tpu.memory_space<vmem>>, vector<1x1x8xf32>
    %15 = vector.shape_cast %14 : vector<1x1x8xf32> to vector<1x8xf32>
    %16 = vector.broadcast %15 : vector<1x8xf32> to vector<8x8xf32>
    %17 = arith.addf %13, %16 : vector<8x8xf32>
    %cst_12 = arith.constant dense<0xFF800000> : vector<8xf32>
    %18 = vector.multi_reduction <maximumf>, %17, %cst_12 [1] : vector<8x8xf32> to vector<8xf32>
    %19 = vector.shape_cast %18 : vector<8xf32> to vector<8x1xf32>
    %20 = vector.broadcast %19 : vector<8x1xf32> to vector<8x8xf32>
    %21 = arith.subf %17, %20 : vector<8x8xf32>
    %22 = math.exp %21 : vector<8x8xf32>
    %cst_13 = arith.constant dense<0.000000e+00> : vector<8xf32>
    %23 = vector.multi_reduction <add>, %22, %cst_13 [1] : vector<8x8xf32> to vector<8xf32>
    %24 = vector.shape_cast %23 : vector<8xf32> to vector<8x1xf32>
    %25 = tpu.reciprocal %24 {approx = true} : vector<8x1xf32> -> vector<8x1xf32>
    %26 = vector.broadcast %25 : vector<8x1xf32> to vector<8x8xf32>
    %27 = arith.mulf %22, %26 : vector<8x8xf32>
    %28 = arith.truncf %27 : vector<8x8xf32> to vector<8x8xbf16>
    %cst_14 = arith.constant dense<0.000000e+00> : vector<8x8xf32>
    %29 = tpu.matmul %28, %12, %cst_14 {dimension_numbers = #tpu.dot_dimension_numbers<[1], [0], [0], [1], [0, 0, 1, 1], [], []>} : vector<8x8xbf16>, vector<8x8xbf16>, vector<8x8xf32> -> vector<8x8xf32>
    %30 = arith.truncf %29 : vector<8x8xf32> to vector<8x8xbf16>
    %c0_15 = arith.constant 0 : index
    %c0_16 = arith.constant 0 : index
    %c0_17 = arith.constant 0 : index
    %c0_18 = arith.constant 0 : index
    %31 = vector.load %arg6[%c0_15, %c0_16, %c0_17, %c0_18] : memref<1x1x8x8xbf16, #tpu.memory_space<vmem>>, vector<1x1x8x8xbf16>
    %32 = vector.shape_cast %31 : vector<1x1x8x8xbf16> to vector<8x8xbf16>
    %33 = vector.shape_cast %30 : vector<8x8xbf16> to vector<1x1x8x8xbf16>
    tpu.vector_store %arg6[%c0_15, %c0_16, %c0_17, %c0_18], %33 {strides = array<i32>} : memref<1x1x8x8xbf16, #tpu.memory_space<vmem>>, vector<1x1x8x8xbf16>,
    return
  }
  func.func @transform_0(%arg0: i32, %arg1: i32) -> (i32, i32, i32) {
    %c0_i32 = arith.constant 0 : i32
    %c0_i32_0 = arith.constant 0 : i32
    %c0_i32_1 = arith.constant 0 : i32
    return %arg0, %c0_i32, %c0_i32_0 : i32, i32, i32
  }
  func.func @transform_1(%arg0: i32, %arg1: i32) -> (i32, i32, i32) {
    %c0_i32 = arith.constant 0 : i32
    %c0_i32_0 = arith.constant 0 : i32
    %c0_i32_1 = arith.constant 0 : i32
    return %arg1, %c0_i32, %c0_i32_0 : i32, i32, i32
  }
  func.func @transform_2(%arg0: i32, %arg1: i32) -> (i32, i32, i32) {
    %c0_i32 = arith.constant 0 : i32
    %c0_i32_0 = arith.constant 0 : i32
    %c0_i32_1 = arith.constant 0 : i32
    return %arg1, %c0_i32, %c0_i32_0 : i32, i32, i32
  }
  func.func @transform_3(%arg0: i32, %arg1: i32) -> (i32, i32, i32) {
    %c0_i32 = arith.constant 0 : i32
    %c0_i32_0 = arith.constant 0 : i32
    %c0_i32_1 = arith.constant 0 : i32
    return %arg0, %c0_i32, %c0_i32_0 : i32, i32, i32
  }
  func.func @transform_4(%arg0: i32, %arg1: i32) -> (i32, i32, i32, i32) {
    %c0_i32 = arith.constant 0 : i32
    %c0_i32_0 = arith.constant 0 : i32
    %c0_i32_1 = arith.constant 0 : i32
    return %arg0, %arg1, %c0_i32, %c0_i32_0 : i32, i32, i32, i32
  }
}

module attributes {stable_mosaic.version = 11 : i64} {
  func.func @_layernorm_kernel(%arg0: i32, %arg1: memref<16x32xf32, #tpu.memory_space<vmem>>, %arg2: memref<1x32xf32, #tpu.memory_space<vmem>>, %arg3: memref<1x32xf32, #tpu.memory_space<vmem>>, %arg4: memref<16x32xbf16, #tpu.memory_space<vmem>>) attributes {dimension_semantics = [#tpu.dimension_semantics<parallel>], iteration_bounds = array<i64: 1>, scalar_prefetch = 0 : i64, scratch_operands = 0 : i64, tpu.core_type = #tpu.core_type<tc>, window_params = [{transform_indices = @transform_0, window_bounds = array<i64: 16, 32>}, {pipeline_mode = #tpu.pipeline_mode<synchronous>, transform_indices = @transform_1, window_bounds = array<i64: 1, 32>}, {pipeline_mode = #tpu.pipeline_mode<synchronous>, transform_indices = @transform_2, window_bounds = array<i64: 1, 32>}, {transform_indices = @transform_3, window_bounds = array<i64: 16, 32>}]} {
    %c0 = arith.constant 0 : index
    %c0_0 = arith.constant 0 : index
    %0 = vector.load %arg1[%c0, %c0_0] : memref<16x32xf32, #tpu.memory_space<vmem>>, vector<16x32xf32>
    %cst = arith.constant dense<0.000000e+00> : vector<16xf32>
    %1 = vector.multi_reduction <add>, %0, %cst [1] : vector<16x32xf32> to vector<16xf32>
    %2 = vector.shape_cast %1 : vector<16xf32> to vector<16x1xf32>
    %cst_1 = arith.constant 3.200000e+01 : f32
    %3 = vector.broadcast %cst_1 : f32 to vector<16x1xf32>
    %4 = arith.divf %2, %3 : vector<16x1xf32>
    %5 = vector.broadcast %4 : vector<16x1xf32> to vector<16x32xf32>
    %6 = arith.subf %0, %5 : vector<16x32xf32>
    %7 = arith.mulf %6, %6 : vector<16x32xf32>
    %cst_2 = arith.constant dense<0.000000e+00> : vector<16xf32>
    %8 = vector.multi_reduction <add>, %7, %cst_2 [1] : vector<16x32xf32> to vector<16xf32>
    %9 = vector.shape_cast %8 : vector<16xf32> to vector<16x1xf32>
    %cst_3 = arith.constant 3.200000e+01 : f32
    %10 = vector.broadcast %cst_3 : f32 to vector<16x1xf32>
    %11 = arith.divf %9, %10 : vector<16x1xf32>
    %12 = vector.broadcast %4 : vector<16x1xf32> to vector<16x32xf32>
    %13 = arith.subf %0, %12 : vector<16x32xf32>
    %cst_4 = arith.constant 9.99999974E-6 : f32
    %14 = vector.broadcast %cst_4 : f32 to vector<16x1xf32>
    %15 = arith.addf %11, %14 : vector<16x1xf32>
    %16 = math.rsqrt %15 : vector<16x1xf32>
    %17 = vector.broadcast %16 : vector<16x1xf32> to vector<16x32xf32>
    %18 = arith.mulf %13, %17 : vector<16x32xf32>
    %c0_5 = arith.constant 0 : index
    %c0_6 = arith.constant 0 : index
    %19 = vector.load %arg2[%c0_5, %c0_6] : memref<1x32xf32, #tpu.memory_space<vmem>>, vector<1x32xf32>
    %20 = vector.broadcast %19 : vector<1x32xf32> to vector<16x32xf32>
    %21 = arith.mulf %18, %20 : vector<16x32xf32>
    %c0_7 = arith.constant 0 : index
    %c0_8 = arith.constant 0 : index
    %22 = vector.load %arg3[%c0_7, %c0_8] : memref<1x32xf32, #tpu.memory_space<vmem>>, vector<1x32xf32>
    %23 = vector.broadcast %22 : vector<1x32xf32> to vector<16x32xf32>
    %24 = arith.addf %21, %23 : vector<16x32xf32>
    %25 = arith.truncf %24 : vector<16x32xf32> to vector<16x32xbf16>
    %c0_9 = arith.constant 0 : index
    %c0_10 = arith.constant 0 : index
    %26 = vector.load %arg4[%c0_9, %c0_10] : memref<16x32xbf16, #tpu.memory_space<vmem>>, vector<16x32xbf16>
    tpu.vector_store %arg4[%c0_9, %c0_10], %25 {strides = array<i32>} : memref<16x32xbf16, #tpu.memory_space<vmem>>, vector<16x32xbf16>,
    return
  }
  func.func @transform_0(%arg0: i32) -> (i32, i32) {
    %c0_i32 = arith.constant 0 : i32
    %c0_i32_0 = arith.constant 0 : i32
    return %arg0, %c0_i32 : i32, i32
  }
  func.func @transform_1(%arg0: i32) -> (i32, i32) {
    %c0_i32 = arith.constant 0 : i32
    %c0_i32_0 = arith.constant 0 : i32
    %c0_i32_1 = arith.constant 0 : i32
    return %c0_i32, %c0_i32_0 : i32, i32
  }
  func.func @transform_2(%arg0: i32) -> (i32, i32) {
    %c0_i32 = arith.constant 0 : i32
    %c0_i32_0 = arith.constant 0 : i32
    %c0_i32_1 = arith.constant 0 : i32
    return %c0_i32, %c0_i32_0 : i32, i32
  }
  func.func @transform_3(%arg0: i32) -> (i32, i32) {
    %c0_i32 = arith.constant 0 : i32
    %c0_i32_0 = arith.constant 0 : i32
    return %arg0, %c0_i32 : i32, i32
  }
}

module attributes {stable_mosaic.version = 11 : i64} {
  func.func @_ffn_res_ln_kernel(%arg0: i32, %arg1: i32, %arg2: memref<16x32xbf16, #tpu.memory_space<vmem>>, %arg3: memref<32x64xbf16, #tpu.memory_space<vmem>>, %arg4: memref<1x64xf32, #tpu.memory_space<vmem>>, %arg5: memref<64x32xbf16, #tpu.memory_space<vmem>>, %arg6: memref<1x32xf32, #tpu.memory_space<vmem>>, %arg7: memref<1x32xf32, #tpu.memory_space<vmem>>, %arg8: memref<1x32xf32, #tpu.memory_space<vmem>>, %arg9: memref<16x32xbf16, #tpu.memory_space<vmem>>, %arg10: memref<16x32xf32, #tpu.memory_space<vmem>>) attributes {dimension_semantics = [#tpu.dimension_semantics<parallel>, #tpu.dimension_semantics<arbitrary>], iteration_bounds = array<i64: 1, 1>, scalar_prefetch = 0 : i64, scratch_operands = 1 : i64, tpu.core_type = #tpu.core_type<tc>, window_params = [{transform_indices = @transform_0, window_bounds = array<i64: 16, 32>}, {transform_indices = @transform_1, window_bounds = array<i64: 32, 64>}, {transform_indices = @transform_2, window_bounds = array<i64: 1, 64>}, {transform_indices = @transform_3, window_bounds = array<i64: 64, 32>}, {pipeline_mode = #tpu.pipeline_mode<synchronous>, transform_indices = @transform_4, window_bounds = array<i64: 1, 32>}, {pipeline_mode = #tpu.pipeline_mode<synchronous>, transform_indices = @transform_5, window_bounds = array<i64: 1, 32>}, {pipeline_mode = #tpu.pipeline_mode<synchronous>, transform_indices = @transform_6, window_bounds = array<i64: 1, 32>}, {transform_indices = @transform_7, window_bounds = array<i64: 16, 32>}]} {
    %c0_i32 = arith.constant 0 : i32
    %0 = arith.cmpi eq, %arg1, %c0_i32 : i32
    %1 = arith.extui %0 : i1 to i32
    %c0_i32_0 = arith.constant 0 : i32
    %2 = arith.cmpi ne, %1, %c0_i32_0 : i32
    scf.if %2 {
      %cst_18 = arith.constant 0.000000e+00 : f32
      %26 = vector.broadcast %cst_18 : f32 to vector<16x32xf32>
      %c0_19 = arith.constant 0 : index
      %c0_20 = arith.constant 0 : index
      %27 = vector.load %arg10[%c0_19, %c0_20] : memref<16x32xf32, #tpu.memory_space<vmem>>, vector<16x32xf32>
      tpu.vector_store %arg10[%c0_19, %c0_20], %26 {strides = array<i32>} : memref<16x32xf32, #tpu.memory_space<vmem>>, vector<16x32xf32>,
    } else {
    }
    %c0 = arith.constant 0 : index
    %c0_1 = arith.constant 0 : index
    %3 = vector.load %arg2[%c0, %c0_1] : memref<16x32xbf16, #tpu.memory_space<vmem>>, vector<16x32xbf16>
    %c0_2 = arith.constant 0 : index
    %c0_3 = arith.constant 0 : index
    %4 = vector.load %arg3[%c0_2, %c0_3] : memref<32x64xbf16, #tpu.memory_space<vmem>>, vector<32x64xbf16>
    %cst = arith.constant dense<0.000000e+00> : vector<16x64xf32>
    %5 = tpu.matmul %3, %4, %cst {dimension_numbers = #tpu.dot_dimension_numbers<[1], [0], [0], [1], [0, 0, 1, 1], [], []>} : vector<16x32xbf16>, vector<32x64xbf16>, vector<16x64xf32> -> vector<16x64xf32>
    %c0_4 = arith.constant 0 : index
    %c0_5 = arith.constant 0 : index
    %6 = vector.load %arg4[%c0_4, %c0_5] : memref<1x64xf32, #tpu.memory_space<vmem>>, vector<1x64xf32>
    %7 = vector.broadcast %6 : vector<1x64xf32> to vector<16x64xf32>
    %8 = arith.addf %5, %7 : vector<16x64xf32>
    %cst_6 = arith.constant 5.000000e-01 : f32
    %9 = vector.broadcast %cst_6 : f32 to vector<16x64xf32>
    %10 = arith.mulf %9, %8 : vector<16x64xf32>
    %cst_7 = arith.constant 0.707106769 : f32
    %11 = vector.broadcast %cst_7 : f32 to vector<16x64xf32>
    %12 = arith.mulf %8, %11 : vector<16x64xf32>
    %13 = math.erf %12 : vector<16x64xf32>
    %cst_8 = arith.constant 1.000000e+00 : f32
    %14 = vector.broadcast %cst_8 : f32 to vector<16x64xf32>
    %15 = arith.addf %14, %13 : vector<16x64xf32>
    %16 = arith.mulf %10, %15 : vector<16x64xf32>
    %c0_9 = arith.constant 0 : index
    %c0_10 = arith.constant 0 : index
    %17 = vector.load %arg10[%c0_9, %c0_10] : memref<16x32xf32, #tpu.memory_space<vmem>>, vector<16x32xf32>
    %18 = arith.truncf %16 : vector<16x64xf32> to vector<16x64xbf16>
    %c0_11 = arith.constant 0 : index
    %c0_12 = arith.constant 0 : index
    %19 = vector.load %arg5[%c0_11, %c0_12] : memref<64x32xbf16, #tpu.memory_space<vmem>>, vector<64x32xbf16>
    %cst_13 = arith.constant dense<0.000000e+00> : vector<16x32xf32>
    %20 = tpu.matmul %18, %19, %cst_13 {dimension_numbers = #tpu.dot_dimension_numbers<[1], [0], [0], [1], [0, 0, 1, 1], [], []>} : vector<16x64xbf16>, vector<64x32xbf16>, vector<16x32xf32> -> vector<16x32xf32>
    %21 = arith.addf %17, %20 : vector<16x32xf32>
    %c0_14 = arith.constant 0 : index
    %c0_15 = arith.constant 0 : index
    %22 = vector.load %arg10[%c0_14, %c0_15] : memref<16x32xf32, #tpu.memory_space<vmem>>, vector<16x32xf32>
    tpu.vector_store %arg10[%c0_14, %c0_15], %21 {strides = array<i32>} : memref<16x32xf32, #tpu.memory_space<vmem>>, vector<16x32xf32>,
    %c0_i32_16 = arith.constant 0 : i32
    %23 = arith.cmpi eq, %arg1, %c0_i32_16 : i32
    %24 = arith.extui %23 : i1 to i32
    %c0_i32_17 = arith.constant 0 : i32
    %25 = arith.cmpi ne, %24, %c0_i32_17 : i32
    scf.if %25 {
      %c0_18 = arith.constant 0 : index
      %c0_19 = arith.constant 0 : index
      %26 = vector.load %arg10[%c0_18, %c0_19] : memref<16x32xf32, #tpu.memory_space<vmem>>, vector<16x32xf32>
      %c0_20 = arith.constant 0 : index
      %c0_21 = arith.constant 0 : index
      %27 = vector.load %arg6[%c0_20, %c0_21] : memref<1x32xf32, #tpu.memory_space<vmem>>, vector<1x32xf32>
      %28 = vector.broadcast %27 : vector<1x32xf32> to vector<16x32xf32>
      %29 = arith.addf %26, %28 : vector<16x32xf32>
      %c0_22 = arith.constant 0 : index
      %c0_23 = arith.constant 0 : index
      %30 = vector.load %arg2[%c0_22, %c0_23] : memref<16x32xbf16, #tpu.memory_space<vmem>>, vector<16x32xbf16>
      %31 = arith.extf %30 : vector<16x32xbf16> to vector<16x32xf32>
      %32 = arith.addf %29, %31 : vector<16x32xf32>
      %cst_24 = arith.constant dense<0.000000e+00> : vector<16xf32>
      %33 = vector.multi_reduction <add>, %32, %cst_24 [1] : vector<16x32xf32> to vector<16xf32>
      %34 = vector.shape_cast %33 : vector<16xf32> to vector<16x1xf32>
      %cst_25 = arith.constant 3.200000e+01 : f32
      %35 = vector.broadcast %cst_25 : f32 to vector<16x1xf32>
      %36 = arith.divf %34, %35 : vector<16x1xf32>
      %37 = vector.broadcast %36 : vector<16x1xf32> to vector<16x32xf32>
      %38 = arith.subf %32, %37 : vector<16x32xf32>
      %39 = arith.mulf %38, %38 : vector<16x32xf32>
      %cst_26 = arith.constant dense<0.000000e+00> : vector<16xf32>
      %40 = vector.multi_reduction <add>, %39, %cst_26 [1] : vector<16x32xf32> to vector<16xf32>
      %41 = vector.shape_cast %40 : vector<16xf32> to vector<16x1xf32>
      %cst_27 = arith.constant 3.200000e+01 : f32
      %42 = vector.broadcast %cst_27 : f32 to vector<16x1xf32>
      %43 = arith.divf %41, %42 : vector<16x1xf32>
      %44 = vector.broadcast %36 : vector<16x1xf32> to vector<16x32xf32>
      %45 = arith.subf %32, %44 : vector<16x32xf32>
      %cst_28 = arith.constant 9.99999974E-6 : f32
      %46 = vector.broadcast %cst_28 : f32 to vector<16x1xf32>
      %47 = arith.addf %43, %46 : vector<16x1xf32>
      %48 = math.rsqrt %47 : vector<16x1xf32>
      %49 = vector.broadcast %48 : vector<16x1xf32> to vector<16x32xf32>
      %50 = arith.mulf %45, %49 : vector<16x32xf32>
      %c0_29 = arith.constant 0 : index
      %c0_30 = arith.constant 0 : index
      %51 = vector.load %arg7[%c0_29, %c0_30] : memref<1x32xf32, #tpu.memory_space<vmem>>, vector<1x32xf32>
      %52 = vector.broadcast %51 : vector<1x32xf32> to vector<16x32xf32>
      %53 = arith.mulf %50, %52 : vector<16x32xf32>
      %c0_31 = arith.constant 0 : index
      %c0_32 = arith.constant 0 : index
      %54 = vector.load %arg8[%c0_31, %c0_32] : memref<1x32xf32, #tpu.memory_space<vmem>>, vector<1x32xf32>
      %55 = vector.broadcast %54 : vector<1x32xf32> to vector<16x32xf32>
      %56 = arith.addf %53, %55 : vector<16x32xf32>
      %57 = arith.truncf %56 : vector<16x32xf32> to vector<16x32xbf16>
      %c0_33 = arith.constant 0 : index
      %c0_34 = arith.constant 0 : index
      %58 = vector.load %arg9[%c0_33, %c0_34] : memref<16x32xbf16, #tpu.memory_space<vmem>>, vector<16x32xbf16>
      tpu.vector_store %arg9[%c0_33, %c0_34], %57 {strides = array<i32>} : memref<16x32xbf16, #tpu.memory_space<vmem>>, vector<16x32xbf16>,
    } else {
    }
    return
  }
  func.func @transform_0(%arg0: i32, %arg1: i32) -> (i32, i32) {
    %c0_i32 = arith.constant 0 : i32
    %c0_i32_0 = arith.constant 0 : i32
    return %arg0, %c0_i32 : i32, i32
  }
  func.func @transform_1(%arg0: i32, %arg1: i32) -> (i32, i32) {
    %c0_i32 = arith.constant 0 : i32
    %c0_i32_0 = arith.constant 0 : i32
    return %c0_i32, %arg1 : i32, i32
  }
  func.func @transform_2(%arg0: i32, %arg1: i32) -> (i32, i32) {
    %c0_i32 = arith.constant 0 : i32
    %c0_i32_0 = arith.constant 0 : i32
    return %c0_i32, %arg1 : i32, i32
  }
  func.func @transform_3(%arg0: i32, %arg1: i32) -> (i32, i32) {
    %c0_i32 = arith.constant 0 : i32
    %c0_i32_0 = arith.constant 0 : i32
    return %arg1, %c0_i32 : i32, i32
  }
  func.func @transform_4(%arg0: i32, %arg1: i32) -> (i32, i32) {
    %c0_i32 = arith.constant 0 : i32
    %c0_i32_0 = arith.constant 0 : i32
    %c0_i32_1 = arith.constant 0 : i32
    return %c0_i32, %c0_i32_0 : i32, i32
  }
  func.func @transform_5(%arg0: i32, %arg1: i32) -> (i32, i32) {
    %c0_i32 = arith.constant 0 : i32
    %c0_i32_0 = arith.constant 0 : i32
    %c0_i32_1 = arith.constant 0 : i32
    return %c0_i32, %c0_i32_0 : i32, i32
  }
  func.func @transform_6(%arg0: i32, %arg1: i32) -> (i32, i32) {
    %c0_i32 = arith.constant 0 : i32
    %c0_i32_0 = arith.constant 0 : i32
    %c0_i32_1 = arith.constant 0 : i32
    return %c0_i32, %c0_i32_0 : i32, i32
  }
  func.func @transform_7(%arg0: i32, %arg1: i32) -> (i32, i32) {
    %c0_i32 = arith.constant 0 : i32
    %c0_i32_0 = arith.constant 0 : i32
    return %arg0, %c0_i32 : i32, i32
  }
}

module attributes {stable_mosaic.version = 11 : i64} {
  func.func @_classifier_kernel(%arg0: i32, %arg1: memref<2x32xbf16, #tpu.memory_space<vmem>>, %arg2: memref<32x32xbf16, #tpu.memory_space<vmem>>, %arg3: memref<1x32xf32, #tpu.memory_space<vmem>>, %arg4: memref<32x2xbf16, #tpu.memory_space<vmem>>, %arg5: memref<1x2xf32, #tpu.memory_space<vmem>>, %arg6: memref<2x2xf32, #tpu.memory_space<vmem>>) attributes {dimension_semantics = [#tpu.dimension_semantics<arbitrary>], iteration_bounds = array<i64: 1>, scalar_prefetch = 0 : i64, scratch_operands = 0 : i64, tpu.core_type = #tpu.core_type<tc>, window_params = [{pipeline_mode = #tpu.pipeline_mode<synchronous>, transform_indices = @transform_0, window_bounds = array<i64: 2, 32>}, {pipeline_mode = #tpu.pipeline_mode<synchronous>, transform_indices = @transform_1, window_bounds = array<i64: 32, 32>}, {pipeline_mode = #tpu.pipeline_mode<synchronous>, transform_indices = @transform_2, window_bounds = array<i64: 1, 32>}, {pipeline_mode = #tpu.pipeline_mode<synchronous>, transform_indices = @transform_3, window_bounds = array<i64: 32, 2>}, {pipeline_mode = #tpu.pipeline_mode<synchronous>, transform_indices = @transform_4, window_bounds = array<i64: 1, 2>}, {pipeline_mode = #tpu.pipeline_mode<synchronous>, transform_indices = @transform_5, window_bounds = array<i64: 2, 2>}]} {
    %c0 = arith.constant 0 : index
    %c0_0 = arith.constant 0 : index
    %0 = vector.load %arg1[%c0, %c0_0] : memref<2x32xbf16, #tpu.memory_space<vmem>>, vector<2x32xbf16>
    %c0_1 = arith.constant 0 : index
    %c0_2 = arith.constant 0 : index
    %1 = vector.load %arg2[%c0_1, %c0_2] : memref<32x32xbf16, #tpu.memory_space<vmem>>, vector<32x32xbf16>
    %cst = arith.constant dense<0.000000e+00> : vector<2x32xf32>
    %2 = tpu.matmul %0, %1, %cst {dimension_numbers = #tpu.dot_dimension_numbers<[1], [0], [0], [1], [0, 0, 1, 1], [], []>} : vector<2x32xbf16>, vector<32x32xbf16>, vector<2x32xf32> -> vector<2x32xf32>
    %c0_3 = arith.constant 0 : index
    %c0_4 = arith.constant 0 : index
    %3 = vector.load %arg3[%c0_3, %c0_4] : memref<1x32xf32, #tpu.memory_space<vmem>>, vector<1x32xf32>
    %4 = vector.broadcast %3 : vector<1x32xf32> to vector<2x32xf32>
    %5 = arith.addf %2, %4 : vector<2x32xf32>
    %6 = math.tanh %5 : vector<2x32xf32>
    %7 = arith.truncf %6 : vector<2x32xf32> to vector<2x32xbf16>
    %c0_5 = arith.constant 0 : index
    %c0_6 = arith.constant 0 : index
    %8 = vector.load %arg4[%c0_5, %c0_6] : memref<32x2xbf16, #tpu.memory_space<vmem>>, vector<32x2xbf16>
    %cst_7 = arith.constant dense<0.000000e+00> : vector<2x2xf32>
    %9 = tpu.matmul %7, %8, %cst_7 {dimension_numbers = #tpu.dot_dimension_numbers<[1], [0], [0], [1], [0, 0, 1, 1], [], []>} : vector<2x32xbf16>, vector<32x2xbf16>, vector<2x2xf32> -> vector<2x2xf32>
    %c0_8 = arith.constant 0 : index
    %c0_9 = arith.constant 0 : index
    %10 = vector.load %arg5[%c0_8, %c0_9] : memref<1x2xf32, #tpu.memory_space<vmem>>, vector<1x2xf32>
    %11 = vector.broadcast %10 : vector<1x2xf32> to vector<2x2xf32>
    %12 = arith.addf %9, %11 : vector<2x2xf32>
    %c0_10 = arith.constant 0 : index
    %c0_11 = arith.constant 0 : index
    %13 = vector.load %arg6[%c0_10, %c0_11] : memref<2x2xf32, #tpu.memory_space<vmem>>, vector<2x2xf32>
    tpu.vector_store %arg6[%c0_10, %c0_11], %12 {strides = array<i32>} : memref<2x2xf32, #tpu.memory_space<vmem>>, vector<2x2xf32>,
    return
  }
  func.func @transform_0(%arg0: i32) -> (i32, i32) {
    %c0_i32 = arith.constant 0 : i32
    %c0_i32_0 = arith.constant 0 : i32
    %c0_i32_1 = arith.constant 0 : i32
    return %c0_i32, %c0_i32_0 : i32, i32
  }
  func.func @transform_1(%arg0: i32) -> (i32, i32) {
    %c0_i32 = arith.constant 0 : i32
    %c0_i32_0 = arith.constant 0 : i32
    %c0_i32_1 = arith.constant 0 : i32
    return %c0_i32, %c0_i32_0 : i32, i32
  }
  func.func @transform_2(%arg0: i32) -> (i32, i32) {
    %c0_i32 = arith.constant 0 : i32
    %c0_i32_0 = arith.constant 0 : i32
    %c0_i32_1 = arith.constant 0 : i32
    return %c0_i32, %c0_i32_0 : i32, i32
  }
  func.func @transform_3(%arg0: i32) -> (i32, i32) {
    %c0_i32 = arith.constant 0 : i32
    %c0_i32_0 = arith.constant 0 : i32
    %c0_i32_1 = arith.constant 0 : i32
    return %c0_i32, %c0_i32_0 : i32, i32
  }
  func.func @transform_4(%arg0: i32) -> (i32, i32) {
    %c0_i32 = arith.constant 0 : i32
    %c0_i32_0 = arith.constant 0 : i32
    %c0_i32_1 = arith.constant 0 : i32
    return %c0_i32, %c0_i32_0 : i32, i32
  }
  func.func @transform_5(%arg0: i32) -> (i32, i32) {
    %c0_i32 = arith.constant 0 : i32
    %c0_i32_0 = arith.constant 0 : i32
    %c0_i32_1 = arith.constant 0 : i32
    return %c0_i32, %c0_i32_0 : i32, i32
  }
}

</mosaic_0001>

<bundles_post_ra>
// kernel: roberta_glue_forward.8
= control target key start
LH: loop header
LB: loop body
LE: loop exit
PB: predicated region body
PF: predicated region fallthrough
CT: control target
= control target key end

     0   :  { %vm16_vm0 = vcmask 261120   ;;  %vm70_vm1 = vcmask 257024   ;;  %s129_s0 = inlined_call_operand.vmem [shape: f32[16,32], index: 0, kind: input, shape index: {}]   ;;  %s130_s1 = inlined_call_operand.vmem [shape: f32[1,32], index: 1, kind: input, shape index: {}]   ;;  %s131_s2 = inlined_call_operand.vmem [shape: f32[1,32], index: 2, kind: input, shape index: {}]   ;;  %s132_s3 = inlined_call_operand.vmem [shape: bf16[16,32], index: 3, kind: output, shape index: {}]  }
   0x1   :  { %v14_v0 = vld [vmem:[%s129_s0] sm:$0xff]  ;;  %v15_v1 = vld [vmem:[%s129_s0 + $0x8] sm:$0xff] }
   0x2   :  { %v17_v2 = vsel %vm16_vm0, %v14_v0, 0.0  ;;  %v20_v3 = vsel %vm16_vm0, %v15_v1, 0.0  ;;  %v77_v21 = vld [vmem:[%s130_s1] ss:$0 sm:$0xff] }
   0x3   :  { %18 = vadd.xlane.f32.xlu0 %v17_v2  ;;  %v78_v23 = vld [vmem:[%s131_s2] ss:$0 sm:$0xff] }
   0x7   :  { %21 = vadd.xlane.f32.xlu0 %v20_v3 }
  0x8c   :  { %v19_v4 = vpop.xlane.xlu0 %18 }
  0x8d   :  { %v24_v5 = vmul.f32 0.03125, %v19_v4 }
  0x8f   :  { %v26_v6 = vsub.f32 %v14_v0, %v24_v5 }
  0x90   :  { %v22_v7 = vpop.xlane.xlu0 %21 }
  0x91   :  { %v25_v8 = vmul.f32 0.03125, %v22_v7  ;;  %v28_v9 = vmul.f32 %v26_v6, %v26_v6 }
  0x93   :  { %v27_v10 = vsub.f32 %v15_v1, %v25_v8  ;;  %v30_v11 = vsel %vm16_vm0, %v28_v9, 0.0 }
  0x94   :  { %31 = vadd.xlane.f32.xlu1 %v30_v11 }
  0x95   :  { %v29_v12 = vmul.f32 %v27_v10, %v27_v10 }
  0x97   :  { %v33_v13 = vsel %vm16_vm0, %v29_v12, 0.0 }
  0x98   :  { %34 = vadd.xlane.f32.xlu1 %v33_v13 }
 0x11d   :  { %v32_v14 = vpop.xlane.xlu1 %31 }
 0x11e   :  { %v36_v15 = vmul.f32 0.03125, %v32_v14 }
 0x120   :  { %v38_v16 = vadd.f32 1e-05, %v36_v15 }
 0x121   :  { %v35_v17 = vpop.xlane.xlu1 %34 }
 0x122   :  { %83 = vrsqrt.f32 %v38_v16  ;;  %v37_v18 = vmul.f32 0.03125, %v35_v17 }
 0x124   :  { %v39_v19 = vadd.f32 1e-05, %v37_v18 }
 0x126   :  { %85 = vrsqrt.f32 %v39_v19 }
 0x12f   :  { %v84_v20 = vpop.eup %83 }
 0x130   :  { %v42_v22 = vmul.f32 %v84_v20, %v26_v6 }
 0x132   :  { %v51_v24 = vmul.f32 %v77_v21, %v42_v22 }
 0x133   :  { %v86_v25 = vpop.eup %85 }
 0x134   :  { %v60_v26 = vadd.f32 %v78_v23, %v51_v24  ;;  %v43_v27 = vmul.f32 %v86_v25, %v27_v10 }
 0x136   :  { %v81_v28 = vpack.c.bf16 %v60_v26, %v60_v26  ;;  %v52_v29 = vmul.f32 %v77_v21, %v43_v27 }
 0x138   :  { %71 = vst.msk [vmem:[%s132_s3] sm:$0xf] %vm70_vm1, %v81_v28  ;;  %v61_v30 = vadd.f32 %v78_v23, %v52_v29 }
 0x13a   :  { %v82_v31 = vpack.c.bf16 %v61_v30, %v61_v30 }
 0x13c   :  { %72 = vst.msk [vmem:[%s132_s3 + $0x4] sm:$0xf] %vm70_vm1, %v82_v31 }

// kernel: roberta_glue_forward.10
= control target key start
LH: loop header
LB: loop body
LE: loop exit
PB: predicated region body
PF: predicated region fallthrough
CT: control target
= control target key end

     0   :  { %s660_s21 = smov 0   ;;  %s662_s22 = smov 0   ;;  %s750_s0 = inlined_call_operand.vmem [shape: bf16[2,4,8,8], index: 0, kind: input, shape index: {}]   ;;  %s751_s1 = inlined_call_operand.vmem [shape: bf16[4,8,32], index: 1, kind: input, shape index: {}]   ;;  %s752_s2 = inlined_call_operand.vmem [shape: f32[1,32], index: 2, kind: input, shape index: {}]   ;;  %s753_s3 = inlined_call_operand.vmem [shape: bf16[2,8,32], index: 3, kind: input, shape index: {}]   ;;  %s754_s4 = inlined_call_operand.vmem [shape: f32[1,32], index: 4, kind: input, shape index: {}]   ;;  %s755_s5 = inlined_call_operand.vmem [shape: f32[1,32], index: 5, kind: input, shape index: {}]   ;;  %s756_s6 = inlined_call_operand.vmem [shape: bf16[2,8,32], index: 6, kind: output, shape index: {}]  }
   0x1   :  { %s664_s23 = smov 0   ;;  %s666_s24 = smov 0  }
   0x2   :  { %s668_s25 = smov 0  }
   0x3 LB: > { %s25_s26 = sadd.s32 1, %s612_s23  ;;  %s28_s27 = sadd.s32 1, %s616_s24  ;;  %s620_s25 = sphi %s668_s25, %s16_s25   ;;  %s616_s24 = sphi %s666_s24, %s760_s24   ;;  %s612_s23 = sphi %s664_s23, %s759_s23   ;;  %s608_s22 = sphi %s662_s22, %s758_s22   ;;  %s604_s21 = sphi %s660_s21, %s757_s21  }
   0x4   : > { %p26_p0 = scmp.ge.s32.totalorder %s25_s26, 4  ;;  %p515_p1 = scmp.ge.s32.totalorder %s620_s25, 1 }
   0x5   : > { %p247_p2 = scmp.lt.s32.totalorder %s620_s25, 9 }
   0x6   : > { %s762_s26 = smov (%p26_p0, %s25_s26), 0  ;;  %s764_s27 = smov (!%p26_p0, %s28_s27), %s616_s24 }
   0x7   : > { %p248_p3 = pnand %p515_p1, %p247_p2  ;;  %p30_p4 = scmp.ge.s32.totalorder %s764_s27, 2 }
   0x8   : > { %p287_p5 = scmp.lt.s32.totalorder (!%p248_p3), %s608_s22, 1  ;;  %p289_p6 = scmp.lt.s32.totalorder (!%p248_p3), %s604_s21, 3 }
   0x9   : > { %s766_s27 = smov (%p30_p4, %s764_s27), 0  ;;  %251 = sbr.rel (%p248_p3) target bundleno = 546 (0x222), region = 44 }
   0xa   : > { %p521_p7 = scmp.ne.s32.totalorder (!%p248_p3), %s604_s21, 0 }
   0xe   : > { %s768_s22 = smov (!%p287_p5, %s608_s22), 1 }
   0xf   : > { %s290_s28 = scalar_select %p289_p6, %s604_s21, 3 }
  0x10   : > { %s694_s29 = sshll.u32 %s768_s22, 2  ;;  %311 = sbr.rel (%p521_p7) target bundleno = 23 (0x17), region = 48 }
  0x11   : > { %s292_s30 = sadd.s32 %s694_s29, %s290_s28  ;;  %s518_s7 = sshll.u32 %s290_s28, 2 }
  0x12   : > { %s517_s8 = sshll.u32 %s292_s30, 2  ;;  %s298_s11 = scalar_lea.vmem %s751_s1, %s518_s7 }
  0x13   : > { %s294_s14 = scalar_lea.vmem %s750_s0, %s517_s8  ;;  %s302_s17 = scalar_lea.vmem %s753_s3, %s694_s29 }
  0x14   : > { %s306_s20 = scalar_lea.vmem %s756_s6, %s694_s29 }
  0x15   : > { %vm312_vm0 = vcmask 261120   ;;  %v622_v0 = vmov 0.0  }
  0x16   : > { %313 = vst.msk [vmem:[#allocation2] sm:$0xff] %vm312_vm0, %v622_v0 }
  0x17 PF: > { %v316_v1 = vld [vmem:[%s298_s11] sm:$0xf]  ;;  %vm321_vm1 = vcmask 1043456   ;;  %v623_v2 = vmov 0.0   ;;  %vm624_vm2 = vmmov 0   ;;  %vm317_vm3 = vcmask 64512  }
  0x18   : > { %531 = vmatprep.subr.bf16.mxu0 %v623_v2  ;;  %v323_v3 = vsel %vm321_vm1, %v316_v1, 0  ;;  %533 = vmatprep.mubr.msk.bf16.mxu0 %vm624_vm2, %v623_v2  ;;  %v315_v4 = vld [vmem:[%s294_s14] sm:$0xf]  ;;  %vm366_vm4 = vcmask 261120   ;;  %p523_p8 = scmp.ne.s32.totalorder %s604_s21, 3 }
  0x19   : > { %532 = vmatpush3.bf16.msra.mxu0 %v323_v3 }
  0x1c   : > { %534 = vmatmul.mubr.msk.bf16.vlgmr.msra.gmra.mxu0 %vm317_vm3, %v315_v4 }
  0x1d   : > { %v314_v5 = vld [vmem:[#allocation2] sm:$0xff] }
  0xdc   : > { %v359_v6 = vpop.f32.mrf.mxu0 }
  0xdd   : > { %v365_v7 = vadd.f32 %v359_v6, %v314_v5 }
  0xde   : > { %v535_v8 = vpop.f32.mrf.mxu0  ;;  %371 = sbr.rel (%p523_p8) target bundleno = 546 (0x222), region = 52 }
  0xdf   : > { %367 = vst.msk [vmem:[#allocation2] sm:$0xff] %vm366_vm4, %v365_v7 }
  0xe0   : > { %v362_v9 = vpop.f32.mrf.mxu0 }
  0xe2   : > { %v536_v10 = vpop.f32.mrf.mxu0 }
  0xe3   : > { %v524_v12 = vld [vmem:[%s752_s2] ss:$0 sm:$0xff]  ;;  %vm415_vm5 = vcmask 257024  }
  0xe4   : > { %v381_v13 = vld [vmem:[%s302_s17] sm:$0xf] }
  0xe5   : > { %v382_v15 = vunpack.c.l.bf16 %v381_v13  ;;  %v525_v27 = vld [vmem:[%s754_s4] ss:$0 sm:$0xff] }
  0xe6   : > { %v372_v11 = vld [vmem:[#allocation2] sm:$0xff] }
  0xe7   : > { %v380_v14 = vadd.f32 %v524_v12, %v372_v11  ;;  %v526_v29 = vld [vmem:[%s755_s5] ss:$0 sm:$0xff] }
  0xe9   : > { %v383_v16 = vadd.f32 %v382_v15, %v380_v14 }
  0xeb   : > { %v384_v17 = vsel %vm366_vm4, %v383_v16, 0.0 }
  0xec   : > { %385 = vadd.xlane.f32.xlu0 %v384_v17 }
 0x175   : > { %v386_v18 = vpop.xlane.xlu0 %385 }
 0x176   : > { %v388_v19 = vmul.f32 0.03125, %v386_v18 }
 0x178   : > { %v389_v20 = vsub.f32 %v383_v16, %v388_v19 }
 0x17a   : > { %v390_v21 = vmul.f32 %v389_v20, %v389_v20 }
 0x17c   : > { %v391_v22 = vsel %vm366_vm4, %v390_v21, 0.0 }
 0x17d   : > { %392 = vadd.xlane.f32.xlu0 %v391_v22 }
 0x206   : > { %v393_v23 = vpop.xlane.xlu0 %392 }
 0x207   : > { %v394_v24 = vmul.f32 0.03125, %v393_v23 }
 0x209   : > { %v395_v25 = vadd.f32 1e-05, %v394_v24 }
 0x20b   : > { %580 = vrsqrt.f32 %v395_v25 }
 0x218   : > { %v581_v26 = vpop.eup %580 }
 0x219   : > { %v397_v28 = vmul.f32 %v581_v26, %v389_v20 }
 0x21b   : > { %v405_v30 = vmul.f32 %v525_v27, %v397_v28 }
 0x21d   : > { %v413_v31 = vadd.f32 %v526_v29, %v405_v30 }
 0x21f   : > { %v414_v32 = vpack.c.bf16 %v413_v31, %v413_v31 }
 0x221   : > { %416 = vst.msk [vmem:[%s306_s20] sm:$0xf] %vm415_vm5, %v414_v32 }
 0x222 PF: > { %s16_s25 = sadd.s32 1, %s620_s25   ;;  %s757_s21 = smov %s612_s23 }
 0x223   : > { %p13_p9 = scmp.ge.s32.totalorder %s16_s25, 10   ;;  %s758_s22 = smov %s616_s24 }
 0x224   : > { %s759_s23 = smov %s762_s26  ;;  %s760_s24 = smov %s766_s27 }
 0x225   :  { %15 = sbr.rel (!%p13_p9) target bundleno = 3 (0x3), region = 88 }

// kernel: roberta_glue_forward.9
= control target key start
LH: loop header
LB: loop body
LE: loop exit
PB: predicated region body
PF: predicated region fallthrough
CT: control target
= control target key end

     0   :  { %s730_s15 = smov 0   ;;  %s732_s16 = smov 0   ;;  %s805_s0 = inlined_call_operand.vmem [shape: bf16[2,8,32], index: 0, kind: input, shape index: {}]   ;;  %s806_s1 = inlined_call_operand.vmem [shape: bf16[4,32,24], index: 1, kind: input, shape index: {}]   ;;  %s807_s2 = inlined_call_operand.vmem [shape: f32[4,1,24], index: 2, kind: input, shape index: {}]   ;;  %s808_s3 = inlined_call_operand.vmem [shape: f32[2,1,8], index: 3, kind: input, shape index: {}]   ;;  %s809_s4 = inlined_call_operand.vmem [shape: bf16[2,4,8,8], index: 4, kind: output, shape index: {}]  }
   0x1   :  { %s734_s17 = smov 0   ;;  %s736_s18 = smov 0  }
   0x2   :  { %s738_s19 = smov 0  }
   0x3 LB: > { %s23_s20 = sadd.s32 1, %s691_s17  ;;  %s26_s21 = sadd.s32 1, %s695_s18  ;;  %s699_s19 = sphi %s738_s19, %s14_s19   ;;  %s695_s18 = sphi %s736_s18, %s813_s18   ;;  %s691_s17 = sphi %s734_s17, %s812_s17   ;;  %s687_s16 = sphi %s732_s16, %s811_s16   ;;  %s683_s15 = sphi %s730_s15, %s810_s15  }
   0x4   : > { %p24_p0 = scmp.ge.s32.totalorder %s23_s20, 4  ;;  %p568_p1 = scmp.ge.s32.totalorder %s699_s19, 1 }
   0x5   : > { %p201_p2 = scmp.lt.s32.totalorder %s699_s19, 9 }
   0x6   : > { %s815_s20 = smov (%p24_p0, %s23_s20), 0  ;;  %s817_s21 = smov (!%p24_p0, %s26_s21), %s695_s18 }
   0x7   : > { %p202_p3 = pnand %p568_p1, %p201_p2  ;;  %p28_p4 = scmp.ge.s32.totalorder %s817_s21, 2 }
   0x8   : > { %p244_p5 = scmp.lt.s32.totalorder (!%p202_p3), %s683_s15, 3  ;;  %p240_p6 = scmp.lt.s32.totalorder (!%p202_p3), %s687_s16, 1 }
   0x9   : > { %s819_s21 = smov (%p28_p4, %s817_s21), 0  ;;  %205 = sbr.rel (%p202_p3) target bundleno = 1053 (0x41d), region = 36 }
   0xa   : > { %s703_s8 = smov (!%p202_p3), 120   ;;  %s704_s12 = smov (!%p202_p3), 112  }
   0xe   : > { %v701_v0 = vmov 0.0   ;;  %vm702_vm0 = vmmov 0   ;;  %s821_s15 = smov (!%p244_p5, %s683_s15), 3  ;;  %s823_s16 = smov (!%p240_p6, %s687_s16), 1  ;;  %vm288_vm1 = vcmask 261120   ;;  %vm343_vm2 = vcmask 64512  }
   0xf   : > { %591 = vmatprep.subr.bf16.mxu0 %v701_v0  ;;  %595 = vmatprep.mubr.msk.bf16.mxu0 %vm702_vm0, %v701_v0  ;;  %s583_s22 = sshll.u32 %s821_s15, 4  ;;  %s569_s26 = sshll.u32 %s823_s16, 2  ;;  %vm407_vm3 = vcmask 1043456   ;;  %vm452_vm4 = vcmask 60416  }
  0x10   : > { %599 = vmatprep.subr.bf16.mxu1 %v701_v0  ;;  %601 = vmatprep.mubr.msk.bf16.mxu1 %vm702_vm0, %v701_v0  ;;  %s248_s25 = scalar_lea.vmem %s806_s1, %s583_s22  ;;  %s768_s27 = sadd.s32 %s569_s26, %s821_s15 }
  0x11   : > { %v655_v1 = vld [vmem:[%s248_s25 + $0x8] sm:$0xff]   ;;  %v656_v2 = vld [vmem:[%s248_s25] sm:$0xff]   ;;  %s243_s30 = scalar_lea.vmem %s805_s0, %s569_s26  ;;  %s251_s7 = scalar_lea.vmem %s807_s2, %s821_s15 }
  0x12   : > { %592 = vmatpush3.bf16.msra.mxu0 %v655_v1  ;;  %v264_v3 = vld [vmem:[%s243_s30] sm:$0xf]  ;;  %s254_s11 = scalar_lea.vmem %s808_s3, %s823_s16  ;;  %s573_s13 = sshll.u32 %s768_s27, 2 }
  0x13   : > { %593 = vmatprep.subr.bf16.mxu0 %v701_v0  ;;  %v574_v4 = vld [vmem:[%s251_s7] ss:$0 sm:$0xff]  ;;  %s262_s16 = scalar_lea.vmem %s809_s4, %s573_s13 }
  0x14   : > { %v578_v13 = vld [vmem:[%s254_s11] ss:$0 sm:$0xff] }
  0x16   : > { %594 = vmatpush3.bf16.msra.mxu0 %v656_v2 }
  0x17   : > { %605 = vmatprep.subr.bf16.mxu0 %v701_v0 }
  0x19   : > { %596 = vmatmul.mubr.msk.bf16.vlgmr.msra.gmra.mxu0 %vm288_vm1, %v264_v3 }
  0x1a   : > { %607 = vmatprep.mubr.msk.bf16.mxu0 %vm702_vm0, %v701_v0 }
  0xd9   : > { %v326_v5 = vpop.f32.mrf.mxu0 }
  0xda   : > { %v327_v6 = vadd.f32 %v574_v4, %v326_v5 }
  0xdb   : > { %v597_v7 = vpop.f32.mrf.mxu0 }
  0xdc   : > { %v332_v8 = vpack.c.bf16 %v327_v6, %v327_v6 }
  0xdd   : > { %v329_v9 = vpop.f32.mrf.mxu0 }
  0xde   : > { %341 = vrot.lane.b32.xlu0 %v332_v8, %s703_s8 }
  0xdf   : > { %v598_v10 = vpop.f32.mrf.mxu0 }
 0x150   : > { %v342_v11 = vpop.permute.xlu0 %341 }
 0x151   : > { %v348_v12 = vsel %vm343_vm2, %v342_v11, 0 }
 0x152   : > { %600 = vmatpush3.bf16.xpose.msra.mxu1 %v348_v12 }
 0x159   : > { %602 = vmatmul.mubr.msk.bf16.vlgmr.msra.gmra.mxu1 %vm343_vm2, %v332_v8 }
 0x219   : > { %v384_v14 = vpop.f32.mrf.mxu1 }
 0x21a   : > { %v385_v15 = vadd.f32 %v578_v13, %v384_v14 }
 0x21b   : > { %v603_v16 = vpop.f32.mrf.mxu1 }
 0x21c   : > { %v390_v17 = vsel %vm343_vm2, %v385_v15, -inf }
 0x21d   : > { %391 = vmax.xlane.f32.xlu0 %v390_v17  ;;  %v387_v18 = vpop.f32.mrf.mxu1 }
 0x21f   : > { %v604_v19 = vpop.f32.mrf.mxu1 }
 0x2a6   : > { %v392_v20 = vpop.xlane.xlu0 %391 }
 0x2a7   : > { %v393_v21 = vsub.f32 %v385_v15, %v392_v20 }
 0x2a9   : > { %v394_v22 = vmul.f32 1.442695, %v393_v21 }
 0x2ab   : > { %657 = vpow2.f32 %v394_v22 }
 0x2b8   : > { %v658_v23 = vpop.eup %657 }
 0x2b9   : > { %v396_v24 = vsel %vm343_vm2, %v658_v23, 0.0 }
 0x2ba   : > { %397 = vadd.xlane.f32.xlu1 %v396_v24 }
 0x2cb   : > { %402 = vrot.lane.b32.xlu1 %v332_v8, %s704_s12 }
 0x343   : > { %v398_v25 = vpop.xlane.xlu1 %397 }
 0x344   : > { %659 = vrcp.f32 %v398_v25 }
 0x347   : > { %v403_v26 = vpop.permute.xlu1 %402 }
 0x348   : > { %v409_v27 = vsel %vm407_vm3, %v403_v26, 0 }
 0x349   : > { %606 = vmatpush3.bf16.msra.mxu0 %v409_v27 }
 0x351   : > { %v660_v28 = vpop.eup %659 }
 0x352   : > { %v400_v29 = vmul.f32 %v660_v28, %v658_v23 }
 0x354   : > { %v401_v30 = vpack.c.bf16 %v400_v29, %v400_v29 }
 0x356   : > { %608 = vmatmul.mubr.msk.bf16.vlgmr.msra.gmra.mxu0 %vm343_vm2, %v401_v30 }
 0x416   : > { %v445_v31 = vpop.f32.mrf.mxu0 }
 0x417   : > { %v451_v32 = vpack.c.bf16 %v445_v31, %v445_v31 }
 0x418   : > { %v609_v33 = vpop.f32.mrf.mxu0 }
 0x419   : > { %453 = vst.msk [vmem:[%s262_s16] sm:$0xf] %vm452_vm4, %v451_v32 }
 0x41a   : > { %v448_v34 = vpop.f32.mrf.mxu0 }
 0x41c   : > { %v610_v35 = vpop.f32.mrf.mxu0 }
 0x41d PF: > { %s14_s19 = sadd.s32 1, %s699_s19   ;;  %s810_s15 = smov %s691_s17 }
 0x41e   : > { %p11_p7 = scmp.ge.s32.totalorder %s14_s19, 10   ;;  %s811_s16 = smov %s695_s18 }
 0x41f   : > { %s812_s17 = smov %s815_s20  ;;  %s813_s18 = smov %s819_s21 }
 0x420   :  { %13 = sbr.rel (!%p11_p7) target bundleno = 3 (0x3), region = 75 }

// kernel: roberta_glue_forward.11
= control target key start
LH: loop header
LB: loop body
LE: loop exit
PB: predicated region body
PF: predicated region fallthrough
CT: control target
= control target key end

     0   :  { %vm31_vm0 = vcmask 261120   ;;  %v349_v0 = vmov 0.0   ;;  %vm350_vm1 = vmmov 0   ;;  %vm154_vm2 = vcmask 523264   ;;  %s442_s1 = inlined_call_operand.vmem [shape: bf16[32,64], index: 1, kind: input, shape index: {}]   ;;  %s443_s0 = inlined_call_operand.vmem [shape: bf16[16,32], index: 0, kind: input, shape index: {}]   ;;  %s444_s3 = inlined_call_operand.vmem [shape: bf16[64,32], index: 3, kind: input, shape index: {}]   ;;  %s445_s2 = inlined_call_operand.vmem [shape: f32[1,64], index: 2, kind: input, shape index: {}]   ;;  %s446_s4 = inlined_call_operand.vmem [shape: f32[1,32], index: 4, kind: input, shape index: {}]   ;;  %s447_s5 = inlined_call_operand.vmem [shape: f32[1,32], index: 5, kind: input, shape index: {}]   ;;  %s448_s6 = inlined_call_operand.vmem [shape: f32[1,32], index: 6, kind: input, shape index: {}]   ;;  %s449_s7 = inlined_call_operand.vmem [shape: bf16[16,32], index: 7, kind: output, shape index: {}]  }
   0x1   :  { %312 = vmatprep.subr.bf16.mxu0 %v349_v0  ;;  %v334_v1 = vld [vmem:[%s442_s1 + $0x8] sm:$0xff]   ;;  %316 = vmatprep.mubr.msk.bf16.mxu0 %vm350_vm1, %v349_v0  ;;  %32 = vst.msk [vmem:[#allocation2] sm:$0xff] %vm31_vm0, %v349_v0  ;;  %33 = vst.msk [vmem:[#allocation2 + $0x8] sm:$0xff] %vm31_vm0, %v349_v0  ;;  %v335_v2 = vld [vmem:[%s442_s1] sm:$0xff]   ;;  %vm276_vm3 = vcmask 257024  }
   0x2   :  { %320 = vmatprep.subr.bf16.mxu1 %v349_v0  ;;  %328 = vmatprep.mubr.msk.bf16.mxu1 %vm350_vm1, %v349_v0  ;;  %v336_v3 = vld [vmem:[%s443_s0] sm:$0xff]   ;;  %v337_v4 = vld [vmem:[%s444_s3 + $0x18] sm:$0xff]   ;;  %v338_v5 = vld [vmem:[%s444_s3 + $0x10] sm:$0xff]  }
   0x3   :  { %313 = vmatpush3.bf16.msra.mxu0 %v334_v1  ;;  %321 = vmatpush3.bf16.msra.mxu1 %v337_v4  ;;  %v339_v6 = vld [vmem:[%s444_s3 + $0x8] sm:$0xff]   ;;  %v340_v7 = vld [vmem:[%s444_s3] sm:$0xff]  }
   0x4   :  { %314 = vmatprep.subr.bf16.mxu0 %v349_v0  ;;  %322 = vmatprep.subr.bf16.mxu1 %v349_v0  ;;  %v283_v8 = vld [vmem:[%s445_s2] ss:$0 sm:$0xff] }
   0x5   :  { %v301_v34 = vld [vmem:[%s443_s0] sm:$0xff]  }
   0x6   :  { %v293_v35 = vld [vmem:[%s446_s4] ss:$0 sm:$0xff]  ;;  %v302_v36 = vunpack.c.l.bf16 %v301_v34  ;;  %v303_v40 = vunpack.c.h.bf16 %v301_v34 }
   0x7   :  { %315 = vmatpush3.bf16.msra.mxu0 %v335_v2  ;;  %323 = vmatpush3.bf16.msra.mxu1 %v338_v5  ;;  %v294_v63 = vld [vmem:[%s447_s5] ss:$0 sm:$0xff] }
   0x8   :  { %324 = vmatprep.subr.bf16.mxu1 %v349_v0  ;;  %v119_v26 = vld [vmem:[#allocation2] sm:$0xff]  ;;  %v120_v30 = vld [vmem:[#allocation2 + $0x8] sm:$0xff] }
   0x9   :  { %v295_v1 = vld [vmem:[%s448_s6] ss:$0 sm:$0xff] }
   0xa   :  { %317 = vmatmul.mubr.msk.bf16.vlgmr.msra.gmra.mxu0 %vm31_vm0, %v336_v3 }
   0xb   :  { %325 = vmatpush3.bf16.msra.mxu1 %v339_v6 }
   0xc   :  { %326 = vmatprep.subr.bf16.mxu1 %v349_v0 }
   0xf   :  { %327 = vmatpush3.bf16.msra.mxu1 %v340_v7 }
  0xca   :  { %v102_v9 = vpop.f32.mrf.mxu0 }
  0xcb   :  { %v103_v10 = vadd.f32 %v283_v8, %v102_v9 }
  0xcc   :  { %v318_v11 = vpop.f32.mrf.mxu0 }
  0xcd   :  { %v111_v12 = vmul.f32 0.70710677, %v103_v10  ;;  %v109_v20 = vmul.f32 0.5, %v103_v10 }
  0xce   :  { %v105_v13 = vpop.f32.mrf.mxu0 }
  0xcf   :  { %341 = verf.f32 %v111_v12  ;;  %v106_v14 = vadd.f32 %v283_v8, %v105_v13 }
  0xd0   :  { %v319_v15 = vpop.f32.mrf.mxu0 }
  0xd1   :  { %v112_v16 = vmul.f32 0.70710677, %v106_v14  ;;  %v110_v21 = vmul.f32 0.5, %v106_v14 }
  0xd3   :  { %343 = verf.f32 %v112_v16 }
  0xdc   :  { %v342_v17 = vpop.eup %341 }
  0xdd   :  { %v115_v18 = vadd.f32 1.0, %v342_v17 }
  0xdf   :  { %v117_v23 = vmul.f32 %v115_v18, %v109_v20 }
  0xe0   :  { %v344_v19 = vpop.eup %343 }
  0xe1   :  { %v116_v22 = vadd.f32 1.0, %v344_v19 }
  0xe3   :  { %v118_v24 = vmul.f32 %v116_v22, %v110_v21 }
  0xe5   :  { %v121_v25 = vpack.c.bf16 %v118_v24, %v117_v23 }
  0xe7   :  { %329 = vmatmul.mubr.msk.bf16.vlgmr.msra.gmra.mxu1 %vm154_vm2, %v121_v25 }
 0x1a7   :  { %v192_v27 = vpop.f32.mrf.mxu1 }
 0x1a8   :  { %v199_v28 = vadd.f32 %v192_v27, %v119_v26 }
 0x1a9   :  { %v330_v29 = vpop.f32.mrf.mxu1 }
 0x1aa   :  { %201 = vst.msk [vmem:[#allocation2] sm:$0xff] %vm31_vm0, %v199_v28 }
 0x1ab   :  { %v195_v31 = vpop.f32.mrf.mxu1 }
 0x1ac   :  { %v200_v32 = vadd.f32 %v195_v31, %v120_v30 }
 0x1ad   :  { %v331_v33 = vpop.f32.mrf.mxu1 }
 0x1ae   :  { %202 = vst.msk [vmem:[#allocation2 + $0x8] sm:$0xff] %vm31_vm0, %v200_v32 }
 0x1b1   :  { %v206_v37 = vld [vmem:[#allocation2] sm:$0xff] }
 0x1b2   :  { %v215_v38 = vadd.f32 %v293_v35, %v206_v37 }
 0x1b4   :  { %v221_v39 = vadd.f32 %v302_v36, %v215_v38 }
 0x1b5   :  { %v207_v41 = vld [vmem:[#allocation2 + $0x8] sm:$0xff] }
 0x1b6   :  { %v223_v42 = vsel %vm31_vm0, %v221_v39, 0.0  ;;  %v216_v43 = vadd.f32 %v293_v35, %v207_v41 }
 0x1b7   :  { %224 = vadd.xlane.f32.xlu0 %v223_v42 }
 0x1b8   :  { %v222_v44 = vadd.f32 %v303_v40, %v216_v43 }
 0x1ba   :  { %v226_v45 = vsel %vm31_vm0, %v222_v44, 0.0 }
 0x1bb   :  { %227 = vadd.xlane.f32.xlu0 %v226_v45 }
 0x240   :  { %v225_v46 = vpop.xlane.xlu0 %224 }
 0x241   :  { %v230_v47 = vmul.f32 0.03125, %v225_v46 }
 0x243   :  { %v232_v48 = vsub.f32 %v221_v39, %v230_v47 }
 0x244   :  { %v228_v49 = vpop.xlane.xlu0 %227 }
 0x245   :  { %v231_v50 = vmul.f32 0.03125, %v228_v49  ;;  %v234_v51 = vmul.f32 %v232_v48, %v232_v48 }
 0x247   :  { %v233_v52 = vsub.f32 %v222_v44, %v231_v50  ;;  %v236_v53 = vsel %vm31_vm0, %v234_v51, 0.0 }
 0x248   :  { %237 = vadd.xlane.f32.xlu1 %v236_v53 }
 0x249   :  { %v235_v54 = vmul.f32 %v233_v52, %v233_v52 }
 0x24b   :  { %v239_v55 = vsel %vm31_vm0, %v235_v54, 0.0 }
 0x24c   :  { %240 = vadd.xlane.f32.xlu1 %v239_v55 }
 0x2d1   :  { %v238_v56 = vpop.xlane.xlu1 %237 }
 0x2d2   :  { %v242_v57 = vmul.f32 0.03125, %v238_v56 }
 0x2d4   :  { %v244_v58 = vadd.f32 1e-05, %v242_v57 }
 0x2d5   :  { %v241_v59 = vpop.xlane.xlu1 %240 }
 0x2d6   :  { %345 = vrsqrt.f32 %v244_v58  ;;  %v243_v60 = vmul.f32 0.03125, %v241_v59 }
 0x2d8   :  { %v245_v61 = vadd.f32 1e-05, %v243_v60 }
 0x2da   :  { %347 = vrsqrt.f32 %v245_v61 }
 0x2e3   :  { %v346_v62 = vpop.eup %345 }
 0x2e4   :  { %v248_v0 = vmul.f32 %v346_v62, %v232_v48 }
 0x2e6   :  { %v257_v2 = vmul.f32 %v294_v63, %v248_v0 }
 0x2e7   :  { %v348_v3 = vpop.eup %347 }
 0x2e8   :  { %v266_v4 = vadd.f32 %v295_v1, %v257_v2  ;;  %v249_v5 = vmul.f32 %v348_v3, %v233_v52 }
 0x2ea   :  { %v298_v6 = vpack.c.bf16 %v266_v4, %v266_v4  ;;  %v258_v7 = vmul.f32 %v294_v63, %v249_v5 }
 0x2ec   :  { %277 = vst.msk [vmem:[%s449_s7] sm:$0xf] %vm276_vm3, %v298_v6  ;;  %v267_v8 = vadd.f32 %v295_v1, %v258_v7 }
 0x2ee   :  { %v299_v9 = vpack.c.bf16 %v267_v8, %v267_v8 }
 0x2f0   :  { %278 = vst.msk [vmem:[%s449_s7 + $0x4] sm:$0xf] %vm276_vm3, %v299_v9 }

// kernel: roberta_glue_forward.15
= control target key start
LH: loop header
LB: loop body
LE: loop exit
PB: predicated region body
PF: predicated region fallthrough
CT: control target
= control target key end

     0   :  { %v235_v1 = vmov 0.0   ;;  %vm236_vm0 = vmmov 0   ;;  %s294_s0 = inlined_call_operand.vmem [shape: bf16[2,32], index: 0, kind: input, shape index: {}]   ;;  %s295_s1 = inlined_call_operand.vmem [shape: bf16[32,32], index: 1, kind: input, shape index: {}]   ;;  %s296_s2 = inlined_call_operand.vmem [shape: f32[1,32], index: 2, kind: input, shape index: {}]   ;;  %s297_s3 = inlined_call_operand.vmem [shape: bf16[32,2], index: 3, kind: input, shape index: {}]   ;;  %s298_s4 = inlined_call_operand.vmem [shape: f32[1,2], index: 4, kind: input, shape index: {}]   ;;  %s299_s5 = inlined_call_operand.hbm [shape: f32[2,2], index: 5, kind: output, shape index: {}]  }
   0x1   :  { %v207_v0 = vld [vmem:[%s295_s1 + $0x8] sm:$0xff]   ;;  %188 = vmatprep.subr.bf16.mxu0 %v235_v1  ;;  %196 = vmatprep.subr.bf16.mxu1 %v235_v1  ;;  %v208_v2 = vld [vmem:[%s295_s1] sm:$0xff]  }
   0x2   :  { %189 = vmatpush3.bf16.msra.mxu0 %v207_v0  ;;  %192 = vmatprep.mubr.msk.bf16.mxu0 %vm236_vm0, %v235_v1 }
   0x3   :  { %190 = vmatprep.subr.bf16.mxu0 %v235_v1  ;;  %200 = vmatprep.mubr.msk.bf16.mxu1 %vm236_vm0, %v235_v1 }
   0x4   :  { %10 = vsyncpa [#allocation3], 0  ;;  %v22_v3 = vld [vmem:[%s294_s0] sm:$0x1]  ;;  %vm46_vm1 = vcmask 261120   ;;  %v209_v4 = vld [vmem:[%s297_s3 + $0x8] sm:$0xff]  }
   0x5   :  { %197 = vmatpush3.bf16.msra.mxu1 %v209_v4  ;;  %v210_v5 = vld [vmem:[%s297_s3] sm:$0xff]   ;;  %s237_s3 = smov [#allocation2]   ;;  %vm158_vm2 = vcmask 9216  }
   0x6   :  { %191 = vmatpush3.bf16.msra.mxu0 %v208_v2  ;;  %198 = vmatprep.subr.bf16.mxu1 %v235_v1  ;;  %v174_v6 = vld [vmem:[%s296_s2] ss:$0 sm:$0xff]  ;;  %s166_s30 = sshll.u32 %s237_s3, 4  ;;  %s167_s30 = int_to_ptr.vmem [resolvable:$true] %s166_s30 }
   0x7   :  { %v178_v14 = vld [vmem:[%s298_s4] ss:$0 sm:$0xff]  ;;  %s213_s2 = scalar_lea.vmem %s167_s30, 32  ;;  %p218_p1 = scmp.lt.s32.totalorder %s167_s30, %s167_s30 }
   0x8   :  { %p214_p0 = scmp.ne.s32.totalorder %s167_s30, %s213_s2  ;;  %p219_p2 = scmp.lt.s32.totalorder %s213_s2, %s213_s2 }
   0x9   :  { %193 = vmatmul.mubr.msk.bf16.vlgmr.msra.gmra.mxu0 %vm46_vm1, %v22_v3  ;;  %199 = vmatpush3.bf16.msra.mxu1 %v210_v5 }
   0xa   :  { %p220_p3 = por %p219_p2, %p218_p1 }
   0xc   :  { %p221_p4 = pnand %p220_p3, %p214_p0 }
  0xc9   :  { %v84_v7 = vpop.f32.mrf.mxu0 }
  0xca   :  { %v85_v8 = vadd.f32 %v174_v6, %v84_v7 }
  0xcb   :  { %v194_v9 = vpop.f32.mrf.mxu0 }
  0xcc   :  { %211 = vtanh.f32 %v85_v8 }
  0xcd   :  { %v87_v10 = vpop.f32.mrf.mxu0 }
  0xcf   :  { %v195_v11 = vpop.f32.mrf.mxu0 }
  0xd9   :  { %v212_v12 = vpop.eup %211 }
  0xda   :  { %v91_v13 = vpack.c.bf16 %v212_v12, %v212_v12 }
  0xdc   :  { %201 = vmatmul.mubr.msk.bf16.vlgmr.msra.gmra.mxu1 %vm46_vm1, %v91_v13 }
 0x19c   :  { %v152_v15 = vpop.f32.mrf.mxu1 }
 0x19d   :  { %v153_v16 = vadd.f32 %v178_v14, %v152_v15 }
 0x19e   :  { %v202_v17 = vpop.f32.mrf.mxu1 }
 0x19f   :  { %159 = vst.msk [vmem:[#allocation2] sm:$0x3] %vm158_vm2, %v153_v16 }
 0x1a0   :  { %v155_v18 = vpop.f32.mrf.mxu1 }
 0x1a1   :  { %224 = shalt.err (!%p221_p4)
}
 0x1a2   :  { %169 = dma.vmem_to_hbm [thread:$0]  %s167_s30, 32, %s299_s5, [#allocation3]   ;;  %v203_v19 = vpop.f32.mrf.mxu1 }
 0x1a3   :  { %233 = dma.done.wait [#allocation3], 32  }
 0x1a4   :  { %234 = vsyncadd [#allocation3], 4294967264 }
 0x1a5   :  { %173 = vsyncpa [#allocation3], 1 }

</bundles_post_ra>
